<compile_context>
chip_gen: v7x
topology: tpu7x:2x2x1
jax: 0.10.0
libtpu: 0.0.40
codegen_flags: <defaults>
</compile_context>

<pallas_src>
import numpy as np

import jax
import jax.numpy as jnp
from jax.experimental import pallas as pl
from jax.experimental.pallas import tpu as pltpu

_VMEM_LIMIT = 32 * 1024 * 1024  # safe on v5e/v6e/v7x; actual usage here is < 1 MiB


# ----------------------------- Pallas kernels ------------------------------

def _full_spec(shape):
    nd = len(shape)
    return pl.BlockSpec(shape, lambda *args, _nd=nd: (0,) * _nd)


def _conv_lrelu_kernel(w_ref, a_ref, o_ref):
    """O^T = W^T @ A^T  (bf16 in, f32 accumulate) + leaky_relu(0.2)."""
    acc = jnp.dot(w_ref[...], a_ref[...], preferred_element_type=jnp.float32)
    o_ref[...] = jnp.maximum(acc, 0.2 * acc).astype(o_ref.dtype)


def conv_lrelu(w_t, a_t, *, out_dtype=jnp.bfloat16, block_m=None):
    """conv (as transposed matmul) + lrelu.

    block_m=None -> single block (right choice on v5e/v6e always, and on v7x at
    small batch).  Only pass block_m=M//2 on v7x when B*OH*OW is large enough
    that a 2-way megacore split pays for the extra grid steps.
    """
    cout, k = w_t.shape
    _, m = a_t.shape
    if block_m is None or m % block_m != 0:
        block_m = m
    return pl.pallas_call(
        _conv_lrelu_kernel,
        out_shape=jax.ShapeDtypeStruct((cout, m), out_dtype),
        grid=(m // block_m,),
        in_specs=[pl.BlockSpec((cout, k), lambda i: (0, 0)),
                  pl.BlockSpec((k, block_m), lambda i: (0, i))],
        out_specs=pl.BlockSpec((cout, block_m), lambda i: (0, i)),
        compiler_params=pltpu.CompilerParams(
            dimension_semantics=("parallel",),
            vmem_limit_bytes=_VMEM_LIMIT),
    )(w_t, a_t)


def _conv_bn_lrelu_kernel(w_ref, a_ref, g_ref, b_ref, o_ref):
    """conv (transposed matmul) + training-mode BatchNorm2d (eps=1e-5) + lrelu(0.2).

    acc is (Cout, B*OH*OW) so per-channel batch stats are lane reductions.
    Two-pass variance (subtract mean first) in f32.
    """
    acc = jnp.dot(w_ref[...], a_ref[...], preferred_element_type=jnp.float32)
    mean = jnp.mean(acc, axis=1, keepdims=True)
    d = acc - mean
    var = jnp.mean(d * d, axis=1, keepdims=True)
    y = d * jax.lax.rsqrt(var + 1e-5)
    y = y * g_ref[...] + b_ref[...]
    o_ref[...] = jnp.maximum(y, 0.2 * y).astype(o_ref.dtype)


def conv_bn_lrelu(w_t, a_t, gamma, beta, out_dtype=jnp.bfloat16):
    # TODO(synk): single-block because training-mode BN needs full-M statistics;
    # for large batches (esp. v7x 64 MiB VMEM) switch to a two-pass grid-
    # accumulated scheme so M can be tiled.
    cout, _ = w_t.shape
    _, m = a_t.shape
    return pl.pallas_call(
        _conv_bn_lrelu_kernel,
        out_shape=jax.ShapeDtypeStruct((cout, m), out_dtype),
        grid=(1,),
        in_specs=[_full_spec(w_t.shape), _full_spec(a_t.shape),
                  _full_spec(gamma.shape), _full_spec(beta.shape)],
        out_specs=_full_spec((cout, m)),
        compiler_params=pltpu.CompilerParams(vmem_limit_bytes=_VMEM_LIMIT),
    )(w_t, a_t, gamma, beta)


def _conv45_kernel(w4_ref, a_ref, w5_ref, mmean_ref, mbcast_ref, msum_ref,
                   w5sum_ref, o_ref):
    """conv4 + MaxPool2d(2) + leaky_relu(0.2) + MinibatchStdDev + conv5 + sigmoid.

    a_ref is (4, K4, B*4): leading axis = 2x2 pool offset, columns ordered (b,i,j)
    over the pooled 2x2 spatial grid.  The std "extra channel" is a constant map,
    so conv5 becomes  sum_c,ij W5[c,ij]*y[c,b,ij] + s*sum(W5_std).
    Batch reductions use tiny constant matrices (no per-sample lane slices).
    """
    # conv4 as 4 matmuls (one per pool offset) with the max fused in.
    pooled = jnp.dot(w4_ref[...], a_ref[0], preferred_element_type=jnp.float32)
    for q in range(1, 4):
        pooled = jnp.maximum(
            pooled,
            jnp.dot(w4_ref[...], a_ref[q], preferred_element_type=jnp.float32))
    y = jnp.maximum(pooled, 0.2 * pooled)                         # (C4, B*4)

    # MinibatchStdDev (two-pass): mean/var over batch per (c, ij) via matmuls.
    mu = jnp.dot(y, mmean_ref[...], preferred_element_type=jnp.float32)        # (C4, 4)
    d = y - jnp.dot(mu, mbcast_ref[...], preferred_element_type=jnp.float32)   # (C4, B*4)
    var = jnp.dot(d * d, mmean_ref[...], preferred_element_type=jnp.float32)   # (C4, 4)
    s = jnp.mean(jnp.sqrt(var + 1e-8))                            # scalar

    # conv5 (2x2, stride 1) on the regular channels + folded std term + sigmoid.
    w5_tiled = jnp.dot(w5_ref[...], mbcast_ref[...],
                       preferred_element_type=jnp.float32)        # (C4, B*4)
    per_c = jnp.dot(y * w5_tiled, msum_ref[...],
                    preferred_element_type=jnp.float32)           # (C4, B)
    logit = jnp.sum(per_c, axis=0, keepdims=True) + s * w5sum_ref[...]
    o_ref[...] = jax.nn.sigmoid(logit)                            # (1, B)


def conv4_pool_mbstd_conv5(w4t, a4, w5m, mmean, mbcast, msum, w5sum):
    bsz = msum.shape[1]
    return pl.pallas_call(
        _conv45_kernel,
        out_shape=jax.ShapeDtypeStruct((1, bsz), jnp.float32),
        grid=(1,),
        in_specs=[_full_spec(w4t.shape), _full_spec(a4.shape), _full_spec(w5m.shape),
                  _full_spec(mmean.shape), _full_spec(mbcast.shape),
                  _full_spec(msum.shape), _full_spec(w5sum.shape)],
        out_specs=_full_spec((1, bsz)),
        compiler_params=pltpu.CompilerParams(vmem_limit_bytes=_VMEM_LIMIT),
    )(w4t, a4, w5m, mmean, mbcast, msum, w5sum)


# ----------------------------- JAX glue (layout / params) ------------------

def _patches(x_cnhw, kh, kw, stride, pad):
    """(C,B,H,W) -> (KH*KW, C, B, OH, OW) patch stack (XLA layout glue)."""
    c, b, h, w = x_cnhw.shape
    if pad:
        x_cnhw = jnp.pad(x_cnhw, ((0, 0), (0, 0), (pad, pad), (pad, pad)))
    oh = (h + 2 * pad - kh) // stride + 1
    ow = (w + 2 * pad - kw) // stride + 1
    p = [x_cnhw[:, :, i:i + stride * (oh - 1) + 1:stride,
                j:j + stride * (ow - 1) + 1:stride]
         for i in range(kh) for j in range(kw)]
    return jnp.stack(p, axis=0), oh, ow


def im2col_t(x_cnhw, kh, kw, stride, pad):
    """A^T (KH*KW*C, B*OH*OW); rows ordered (ki,kj,c), cols ordered (b,oh,ow)."""
    at, oh, ow = _patches(x_cnhw, kh, kw, stride, pad)
    khw, c, b = at.shape[0], at.shape[1], at.shape[2]
    return at.reshape(khw * c, b * oh * ow), oh, ow


def im2col_t_poolsplit(x_cnhw, kh, kw, stride, pad):
    """A^T split by 2x2 pool offset: (4, KH*KW*C, B*(OH/2)*(OW/2)).

    Leading axis indexes (oh_lo, ow_lo); columns ordered (b, oh_hi, ow_hi), so a
    following MaxPool2d(2) is a max over the leading axis.
    """
    at, oh, ow = _patches(x_cnhw, kh, kw, stride, pad)
    khw, c, b = at.shape[0], at.shape[1], at.shape[2]
    at = at.reshape(khw, c, b, oh // 2, 2, ow // 2, 2)
    at = at.transpose(4, 6, 0, 1, 2, 3, 5)      # (oh_lo, ow_lo, KHW, C, B, OH/2, OW/2)
    return at.reshape(4, khw * c, b * (oh // 2) * (ow // 2)), oh // 2, ow // 2


def _w_matrix_t(w_oihw):
    """(Cout,Cin,KH,KW) -> bf16 (Cout, KH*KW*Cin), columns ordered (ki,kj,ci)."""
    cout = w_oihw.shape[0]
    return jnp.transpose(w_oihw, (0, 2, 3, 1)).reshape(cout, -1).astype(jnp.bfloat16)


def spectral_normalize(w, n_iter=30):
    # TODO(synk): torch.nn.utils.spectral_norm keeps a stateful 1-step power-iteration
    # buffer updated per forward; here we use a converged estimate at setup time.
    mat = w.reshape(w.shape[0], -1)
    u = jax.random.normal(jax.random.PRNGKey(1), (mat.shape[0],), jnp.float32)
    u = u / (jnp.linalg.norm(u) + 1e-12)
    for _ in range(n_iter):
        v = mat.T @ u
        v = v / (jnp.linalg.norm(v) + 1e-12)
        u = mat @ v
        u = u / (jnp.linalg.norm(u) + 1e-12)
    sigma = u @ (mat @ v)
    return w / sigma


def init_params(key, nchannels, nfeats):
    ks = jax.random.split(key, 5)

    def w(k, shape):
        return 0.02 * jax.random.normal(k, shape, jnp.float32)

    return {
        "conv1": w(ks[0], (nfeats, nchannels, 4, 4)),
        "conv2": spectral_normalize(w(ks[1], (nfeats * 2, nfeats, 4, 4))),
        "conv3": spectral_normalize(w(ks[2], (nfeats * 4, nfeats * 2, 4, 4))),
        "conv4": spectral_normalize(w(ks[3], (nfeats * 8, nfeats * 4, 4, 4))),
        "conv5": spectral_normalize(w(ks[4], (1, nfeats * 8 + 1, 2, 2))),
        "bn2_gamma": jnp.ones((nfeats * 2,), jnp.float32),
        "bn2_beta": jnp.zeros((nfeats * 2,), jnp.float32),
        "bn3_gamma": jnp.ones((nfeats * 4,), jnp.float32),
        "bn3_beta": jnp.zeros((nfeats * 4,), jnp.float32),
    }


def prepare_params(params):
    """One-time conversion of torch-style params into kernel-ready layouts."""
    w5 = params["conv5"]
    c5_reg = w5.shape[1] - 1                      # regular (non-std) input channels
    return {
        "w1t": _w_matrix_t(params["conv1"]),
        "w2t": _w_matrix_t(params["conv2"]),
        "w3t": _w_matrix_t(params["conv3"]),
        "w4t": _w_matrix_t(params["conv4"]),
        "w5m": w5[0, :c5_reg].reshape(c5_reg, -1).astype(jnp.float32),   # (C4, 4)
        "w5_std_sum": jnp.sum(w5[0, c5_reg]).reshape(1, 1).astype(jnp.float32),
        "bn2_gamma": params["bn2_gamma"].reshape(-1, 1).astype(jnp.float32),
        "bn2_beta": params["bn2_beta"].reshape(-1, 1).astype(jnp.float32),
        "bn3_gamma": params["bn3_gamma"].reshape(-1, 1).astype(jnp.float32),
        "bn3_beta": params["bn3_beta"].reshape(-1, 1).astype(jnp.float32),
    }


def discriminator_forward(kp, x_nchw):
    b = x_nchw.shape[0]
    x = jnp.transpose(x_nchw, (1, 0, 2, 3)).astype(jnp.bfloat16)      # NCHW -> CNHW

    # conv1 + lrelu                         64 -> 32     (single block; no M-tiling)
    a, oh, ow = im2col_t(x, 4, 4, 2, 1)
    x = conv_lrelu(kp["w1t"], a).reshape(-1, b, oh, ow)

    # conv2 + bn2 + lrelu                   32 -> 16
    a, oh, ow = im2col_t(x, 4, 4, 2, 1)
    x = conv_bn_lrelu(kp["w2t"], a, kp["bn2_gamma"], kp["bn2_beta"]).reshape(-1, b, oh, ow)

    # conv3 + bn3 + lrelu                   16 -> 8
    a, oh, ow = im2col_t(x, 4, 4, 2, 1)
    x = conv_bn_lrelu(kp["w3t"], a, kp["bn3_gamma"], kp["bn3_beta"]).reshape(-1, b, oh, ow)

    # conv4 + MaxPool2d(2) + lrelu + MinibatchStdDev + conv5 + sigmoid: ONE kernel.
    a4, poh, pow_ = im2col_t_poolsplit(x, 4, 4, 2, 1)                  # 8 -> 4 -> 2
    assert poh == 2 and pow_ == 2, "architecture requires 64x64 input"
    # Tiny trace-time constant reduction matrices (batch mean / broadcast / per-
    # sample sum) -- keep the kernel free of per-sample lane-slice unrolls.
    eye4 = np.eye(4, dtype=np.float32)
    mmean = np.tile(eye4, (b, 1)) / np.float32(b)     # (B*4, 4): mean over batch
    mbcast = np.tile(eye4, (1, b))                    # (4, B*4): broadcast over batch
    msum = np.repeat(np.eye(b, dtype=np.float32), 4, axis=0)  # (B*4, B): per-sample sum
    out = conv4_pool_mbstd_conv5(kp["w4t"], a4, kp["w5m"],
                                 mmean, mbcast, msum, kp["w5_std_sum"])   # (1, B)
    return out.reshape(-1, 1)                                             # (B, 1)


# ----------------------------- main -----------------------------------------

if __name__ == "__main__":
    nchannels, nfeats = 3, 8
    B, H, W = 2, 64, 64            # 64x64 needed: 64->32->16->8->4 -(pool)-> 2 -(k=2)-> 1

    key = jax.random.PRNGKey(0)
    kx, kparams = jax.random.split(key)
    x = jax.random.normal(kx, (B, nchannels, H, W), jnp.float32)
    params = init_params(kparams, nchannels, nfeats)
    kp = prepare_params(params)

    out = jax.jit(discriminator_forward)(kp, x)
    out = jax.block_until_ready(out)
    assert out.shape == (B, 1)
    assert bool(jnp.all(jnp.isfinite(out)))
    assert bool(jnp.all((out >= 0.0) & (out <= 1.0)))
    print("KERNEL_OK")
</pallas_src>

<mosaic_0001>
module attributes {stable_mosaic.version = 11 : i64} {
  func.func @_conv_lrelu_kernel(%arg0: i32, %arg1: memref<8x48xbf16, #tpu.memory_space<vmem>>, %arg2: memref<48x2048xbf16, #tpu.memory_space<vmem>>, %arg3: memref<8x2048xbf16, #tpu.memory_space<vmem>>) attributes {dimension_semantics = [#tpu.dimension_semantics<parallel>], iteration_bounds = array<i64: 1>, scalar_prefetch = 0 : i64, scratch_operands = 0 : i64, tpu.core_type = #tpu.core_type<tc>, window_params = [{pipeline_mode = #tpu.pipeline_mode<synchronous>, transform_indices = @transform_0, window_bounds = array<i64: 8, 48>}, {transform_indices = @transform_1, window_bounds = array<i64: 48, 2048>}, {transform_indices = @transform_2, window_bounds = array<i64: 8, 2048>}]} {
    %c0 = arith.constant 0 : index
    %c0_0 = arith.constant 0 : index
    %0 = vector.load %arg1[%c0, %c0_0] : memref<8x48xbf16, #tpu.memory_space<vmem>>, vector<8x48xbf16>
    %c0_1 = arith.constant 0 : index
    %c0_2 = arith.constant 0 : index
    %1 = vector.load %arg2[%c0_1, %c0_2] : memref<48x2048xbf16, #tpu.memory_space<vmem>>, vector<48x2048xbf16>
    %cst = arith.constant dense<0.000000e+00> : vector<8x2048xf32>
    %2 = tpu.matmul %0, %1, %cst {dimension_numbers = #tpu.dot_dimension_numbers<[1], [0], [0], [1], [0, 0, 1, 1], [], []>} : vector<8x48xbf16>, vector<48x2048xbf16>, vector<8x2048xf32> -> vector<8x2048xf32>
    %cst_3 = arith.constant 2.000000e-01 : f32
    %3 = vector.broadcast %cst_3 : f32 to vector<8x2048xf32>
    %4 = arith.mulf %3, %2 : vector<8x2048xf32>
    %5 = arith.maximumf %2, %4 : vector<8x2048xf32>
    %6 = arith.truncf %5 : vector<8x2048xf32> to vector<8x2048xbf16>
    %c0_4 = arith.constant 0 : index
    %c0_5 = arith.constant 0 : index
    %7 = vector.load %arg3[%c0_4, %c0_5] : memref<8x2048xbf16, #tpu.memory_space<vmem>>, vector<8x2048xbf16>
    tpu.vector_store %arg3[%c0_4, %c0_5], %6 {strides = array<i32>} : memref<8x2048xbf16, #tpu.memory_space<vmem>>, vector<8x2048xbf16>,
    return
  }
  func.func @transform_0(%arg0: i32) -> (i32, i32) {
    %c0_i32 = arith.constant 0 : i32
    %c0_i32_0 = arith.constant 0 : i32
    %c0_i32_1 = arith.constant 0 : i32
    return %c0_i32, %c0_i32_0 : i32, i32
  }
  func.func @transform_1(%arg0: i32) -> (i32, i32) {
    %c0_i32 = arith.constant 0 : i32
    %c0_i32_0 = arith.constant 0 : i32
    return %c0_i32, %arg0 : i32, i32
  }
  func.func @transform_2(%arg0: i32) -> (i32, i32) {
    %c0_i32 = arith.constant 0 : i32
    %c0_i32_0 = arith.constant 0 : i32
    return %c0_i32, %arg0 : i32, i32
  }
}

module attributes {stable_mosaic.version = 11 : i64} {
  func.func @_conv_bn_lrelu_kernel(%arg0: i32, %arg1: memref<16x128xbf16, #tpu.memory_space<vmem>>, %arg2: memref<128x512xbf16, #tpu.memory_space<vmem>>, %arg3: memref<16x1xf32, #tpu.memory_space<vmem>>, %arg4: memref<16x1xf32, #tpu.memory_space<vmem>>, %arg5: memref<16x512xbf16, #tpu.memory_space<vmem>>) attributes {dimension_semantics = [#tpu.dimension_semantics<arbitrary>], iteration_bounds = array<i64: 1>, scalar_prefetch = 0 : i64, scratch_operands = 0 : i64, tpu.core_type = #tpu.core_type<tc>, window_params = [{pipeline_mode = #tpu.pipeline_mode<synchronous>, transform_indices = @transform_0, window_bounds = array<i64: 16, 128>}, {pipeline_mode = #tpu.pipeline_mode<synchronous>, transform_indices = @transform_1, window_bounds = array<i64: 128, 512>}, {pipeline_mode = #tpu.pipeline_mode<synchronous>, transform_indices = @transform_2, window_bounds = array<i64: 16, 1>}, {pipeline_mode = #tpu.pipeline_mode<synchronous>, transform_indices = @transform_3, window_bounds = array<i64: 16, 1>}, {pipeline_mode = #tpu.pipeline_mode<synchronous>, transform_indices = @transform_4, window_bounds = array<i64: 16, 512>}]} {
    %c0 = arith.constant 0 : index
    %c0_0 = arith.constant 0 : index
    %0 = vector.load %arg1[%c0, %c0_0] : memref<16x128xbf16, #tpu.memory_space<vmem>>, vector<16x128xbf16>
    %c0_1 = arith.constant 0 : index
    %c0_2 = arith.constant 0 : index
    %1 = vector.load %arg2[%c0_1, %c0_2] : memref<128x512xbf16, #tpu.memory_space<vmem>>, vector<128x512xbf16>
    %cst = arith.constant dense<0.000000e+00> : vector<16x512xf32>
    %2 = tpu.matmul %0, %1, %cst {dimension_numbers = #tpu.dot_dimension_numbers<[1], [0], [0], [1], [0, 0, 1, 1], [], []>} : vector<16x128xbf16>, vector<128x512xbf16>, vector<16x512xf32> -> vector<16x512xf32>
    %cst_3 = arith.constant dense<0.000000e+00> : vector<16xf32>
    %3 = vector.multi_reduction <add>, %2, %cst_3 [1] : vector<16x512xf32> to vector<16xf32>
    %4 = vector.shape_cast %3 : vector<16xf32> to vector<16x1xf32>
    %cst_4 = arith.constant 5.120000e+02 : f32
    %5 = vector.broadcast %cst_4 : f32 to vector<16x1xf32>
    %6 = arith.divf %4, %5 : vector<16x1xf32>
    %7 = vector.broadcast %6 : vector<16x1xf32> to vector<16x512xf32>
    %8 = arith.subf %2, %7 : vector<16x512xf32>
    %9 = arith.mulf %8, %8 : vector<16x512xf32>
    %cst_5 = arith.constant dense<0.000000e+00> : vector<16xf32>
    %10 = vector.multi_reduction <add>, %9, %cst_5 [1] : vector<16x512xf32> to vector<16xf32>
    %11 = vector.shape_cast %10 : vector<16xf32> to vector<16x1xf32>
    %cst_6 = arith.constant 5.120000e+02 : f32
    %12 = vector.broadcast %cst_6 : f32 to vector<16x1xf32>
    %13 = arith.divf %11, %12 : vector<16x1xf32>
    %cst_7 = arith.constant 9.99999974E-6 : f32
    %14 = vector.broadcast %cst_7 : f32 to vector<16x1xf32>
    %15 = arith.addf %13, %14 : vector<16x1xf32>
    %16 = math.rsqrt %15 : vector<16x1xf32>
    %17 = vector.broadcast %16 : vector<16x1xf32> to vector<16x512xf32>
    %18 = arith.mulf %8, %17 : vector<16x512xf32>
    %c0_8 = arith.constant 0 : index
    %c0_9 = arith.constant 0 : index
    %19 = vector.load %arg3[%c0_8, %c0_9] : memref<16x1xf32, #tpu.memory_space<vmem>>, vector<16x1xf32>
    %20 = vector.broadcast %19 : vector<16x1xf32> to vector<16x512xf32>
    %21 = arith.mulf %18, %20 : vector<16x512xf32>
    %c0_10 = arith.constant 0 : index
    %c0_11 = arith.constant 0 : index
    %22 = vector.load %arg4[%c0_10, %c0_11] : memref<16x1xf32, #tpu.memory_space<vmem>>, vector<16x1xf32>
    %23 = vector.broadcast %22 : vector<16x1xf32> to vector<16x512xf32>
    %24 = arith.addf %21, %23 : vector<16x512xf32>
    %cst_12 = arith.constant 2.000000e-01 : f32
    %25 = vector.broadcast %cst_12 : f32 to vector<16x512xf32>
    %26 = arith.mulf %25, %24 : vector<16x512xf32>
    %27 = arith.maximumf %24, %26 : vector<16x512xf32>
    %28 = arith.truncf %27 : vector<16x512xf32> to vector<16x512xbf16>
    %c0_13 = arith.constant 0 : index
    %c0_14 = arith.constant 0 : index
    %29 = vector.load %arg5[%c0_13, %c0_14] : memref<16x512xbf16, #tpu.memory_space<vmem>>, vector<16x512xbf16>
    tpu.vector_store %arg5[%c0_13, %c0_14], %28 {strides = array<i32>} : memref<16x512xbf16, #tpu.memory_space<vmem>>, vector<16x512xbf16>,
    return
  }
  func.func @transform_0(%arg0: i32) -> (i32, i32) {
    %c0_i32 = arith.constant 0 : i32
    %c0_i32_0 = arith.constant 0 : i32
    %c0_i32_1 = arith.constant 0 : i32
    return %c0_i32, %c0_i32_0 : i32, i32
  }
  func.func @transform_1(%arg0: i32) -> (i32, i32) {
    %c0_i32 = arith.constant 0 : i32
    %c0_i32_0 = arith.constant 0 : i32
    %c0_i32_1 = arith.constant 0 : i32
    return %c0_i32, %c0_i32_0 : i32, i32
  }
  func.func @transform_2(%arg0: i32) -> (i32, i32) {
    %c0_i32 = arith.constant 0 : i32
    %c0_i32_0 = arith.constant 0 : i32
    %c0_i32_1 = arith.constant 0 : i32
    return %c0_i32, %c0_i32_0 : i32, i32
  }
  func.func @transform_3(%arg0: i32) -> (i32, i32) {
    %c0_i32 = arith.constant 0 : i32
    %c0_i32_0 = arith.constant 0 : i32
    %c0_i32_1 = arith.constant 0 : i32
    return %c0_i32, %c0_i32_0 : i32, i32
  }
  func.func @transform_4(%arg0: i32) -> (i32, i32) {
    %c0_i32 = arith.constant 0 : i32
    %c0_i32_0 = arith.constant 0 : i32
    %c0_i32_1 = arith.constant 0 : i32
    return %c0_i32, %c0_i32_0 : i32, i32
  }
}

module attributes {stable_mosaic.version = 11 : i64} {
  func.func @_conv_bn_lrelu_kernel(%arg0: i32, %arg1: memref<32x256xbf16, #tpu.memory_space<vmem>>, %arg2: memref<256x128xbf16, #tpu.memory_space<vmem>>, %arg3: memref<32x1xf32, #tpu.memory_space<vmem>>, %arg4: memref<32x1xf32, #tpu.memory_space<vmem>>, %arg5: memref<32x128xbf16, #tpu.memory_space<vmem>>) attributes {dimension_semantics = [#tpu.dimension_semantics<arbitrary>], iteration_bounds = array<i64: 1>, scalar_prefetch = 0 : i64, scratch_operands = 0 : i64, tpu.core_type = #tpu.core_type<tc>, window_params = [{pipeline_mode = #tpu.pipeline_mode<synchronous>, transform_indices = @transform_0, window_bounds = array<i64: 32, 256>}, {pipeline_mode = #tpu.pipeline_mode<synchronous>, transform_indices = @transform_1, window_bounds = array<i64: 256, 128>}, {pipeline_mode = #tpu.pipeline_mode<synchronous>, transform_indices = @transform_2, window_bounds = array<i64: 32, 1>}, {pipeline_mode = #tpu.pipeline_mode<synchronous>, transform_indices = @transform_3, window_bounds = array<i64: 32, 1>}, {pipeline_mode = #tpu.pipeline_mode<synchronous>, transform_indices = @transform_4, window_bounds = array<i64: 32, 128>}]} {
    %c0 = arith.constant 0 : index
    %c0_0 = arith.constant 0 : index
    %0 = vector.load %arg1[%c0, %c0_0] : memref<32x256xbf16, #tpu.memory_space<vmem>>, vector<32x256xbf16>
    %c0_1 = arith.constant 0 : index
    %c0_2 = arith.constant 0 : index
    %1 = vector.load %arg2[%c0_1, %c0_2] : memref<256x128xbf16, #tpu.memory_space<vmem>>, vector<256x128xbf16>
    %cst = arith.constant dense<0.000000e+00> : vector<32x128xf32>
    %2 = tpu.matmul %0, %1, %cst {dimension_numbers = #tpu.dot_dimension_numbers<[1], [0], [0], [1], [0, 0, 1, 1], [], []>} : vector<32x256xbf16>, vector<256x128xbf16>, vector<32x128xf32> -> vector<32x128xf32>
    %cst_3 = arith.constant dense<0.000000e+00> : vector<32xf32>
    %3 = vector.multi_reduction <add>, %2, %cst_3 [1] : vector<32x128xf32> to vector<32xf32>
    %4 = vector.shape_cast %3 : vector<32xf32> to vector<32x1xf32>
    %cst_4 = arith.constant 1.280000e+02 : f32
    %5 = vector.broadcast %cst_4 : f32 to vector<32x1xf32>
    %6 = arith.divf %4, %5 : vector<32x1xf32>
    %7 = vector.broadcast %6 : vector<32x1xf32> to vector<32x128xf32>
    %8 = arith.subf %2, %7 : vector<32x128xf32>
    %9 = arith.mulf %8, %8 : vector<32x128xf32>
    %cst_5 = arith.constant dense<0.000000e+00> : vector<32xf32>
    %10 = vector.multi_reduction <add>, %9, %cst_5 [1] : vector<32x128xf32> to vector<32xf32>
    %11 = vector.shape_cast %10 : vector<32xf32> to vector<32x1xf32>
    %cst_6 = arith.constant 1.280000e+02 : f32
    %12 = vector.broadcast %cst_6 : f32 to vector<32x1xf32>
    %13 = arith.divf %11, %12 : vector<32x1xf32>
    %cst_7 = arith.constant 9.99999974E-6 : f32
    %14 = vector.broadcast %cst_7 : f32 to vector<32x1xf32>
    %15 = arith.addf %13, %14 : vector<32x1xf32>
    %16 = math.rsqrt %15 : vector<32x1xf32>
    %17 = vector.broadcast %16 : vector<32x1xf32> to vector<32x128xf32>
    %18 = arith.mulf %8, %17 : vector<32x128xf32>
    %c0_8 = arith.constant 0 : index
    %c0_9 = arith.constant 0 : index
    %19 = vector.load %arg3[%c0_8, %c0_9] : memref<32x1xf32, #tpu.memory_space<vmem>>, vector<32x1xf32>
    %20 = vector.broadcast %19 : vector<32x1xf32> to vector<32x128xf32>
    %21 = arith.mulf %18, %20 : vector<32x128xf32>
    %c0_10 = arith.constant 0 : index
    %c0_11 = arith.constant 0 : index
    %22 = vector.load %arg4[%c0_10, %c0_11] : memref<32x1xf32, #tpu.memory_space<vmem>>, vector<32x1xf32>
    %23 = vector.broadcast %22 : vector<32x1xf32> to vector<32x128xf32>
    %24 = arith.addf %21, %23 : vector<32x128xf32>
    %cst_12 = arith.constant 2.000000e-01 : f32
    %25 = vector.broadcast %cst_12 : f32 to vector<32x128xf32>
    %26 = arith.mulf %25, %24 : vector<32x128xf32>
    %27 = arith.maximumf %24, %26 : vector<32x128xf32>
    %28 = arith.truncf %27 : vector<32x128xf32> to vector<32x128xbf16>
    %c0_13 = arith.constant 0 : index
    %c0_14 = arith.constant 0 : index
    %29 = vector.load %arg5[%c0_13, %c0_14] : memref<32x128xbf16, #tpu.memory_space<vmem>>, vector<32x128xbf16>
    tpu.vector_store %arg5[%c0_13, %c0_14], %28 {strides = array<i32>} : memref<32x128xbf16, #tpu.memory_space<vmem>>, vector<32x128xbf16>,
    return
  }
  func.func @transform_0(%arg0: i32) -> (i32, i32) {
    %c0_i32 = arith.constant 0 : i32
    %c0_i32_0 = arith.constant 0 : i32
    %c0_i32_1 = arith.constant 0 : i32
    return %c0_i32, %c0_i32_0 : i32, i32
  }
  func.func @transform_1(%arg0: i32) -> (i32, i32) {
    %c0_i32 = arith.constant 0 : i32
    %c0_i32_0 = arith.constant 0 : i32
    %c0_i32_1 = arith.constant 0 : i32
    return %c0_i32, %c0_i32_0 : i32, i32
  }
  func.func @transform_2(%arg0: i32) -> (i32, i32) {
    %c0_i32 = arith.constant 0 : i32
    %c0_i32_0 = arith.constant 0 : i32
    %c0_i32_1 = arith.constant 0 : i32
    return %c0_i32, %c0_i32_0 : i32, i32
  }
  func.func @transform_3(%arg0: i32) -> (i32, i32) {
    %c0_i32 = arith.constant 0 : i32
    %c0_i32_0 = arith.constant 0 : i32
    %c0_i32_1 = arith.constant 0 : i32
    return %c0_i32, %c0_i32_0 : i32, i32
  }
  func.func @transform_4(%arg0: i32) -> (i32, i32) {
    %c0_i32 = arith.constant 0 : i32
    %c0_i32_0 = arith.constant 0 : i32
    %c0_i32_1 = arith.constant 0 : i32
    return %c0_i32, %c0_i32_0 : i32, i32
  }
}

module attributes {stable_mosaic.version = 11 : i64} {
  func.func @_conv45_kernel(%arg0: i32, %arg1: memref<64x512xbf16, #tpu.memory_space<vmem>>, %arg2: memref<4x512x8xbf16, #tpu.memory_space<vmem>>, %arg3: memref<64x4xf32, #tpu.memory_space<vmem>>, %arg4: memref<8x4xf32, #tpu.memory_space<vmem>>, %arg5: memref<4x8xf32, #tpu.memory_space<vmem>>, %arg6: memref<8x2xf32, #tpu.memory_space<vmem>>, %arg7: memref<1x1xf32, #tpu.memory_space<vmem>>, %arg8: memref<1x2xf32, #tpu.memory_space<vmem>>) attributes {dimension_semantics = [#tpu.dimension_semantics<arbitrary>], iteration_bounds = array<i64: 1>, scalar_prefetch = 0 : i64, scratch_operands = 0 : i64, tpu.core_type = #tpu.core_type<tc>, window_params = [{pipeline_mode = #tpu.pipeline_mode<synchronous>, transform_indices = @transform_0, window_bounds = array<i64: 64, 512>}, {pipeline_mode = #tpu.pipeline_mode<synchronous>, transform_indices = @transform_1, window_bounds = array<i64: 4, 512, 8>}, {pipeline_mode = #tpu.pipeline_mode<synchronous>, transform_indices = @transform_2, window_bounds = array<i64: 64, 4>}, {pipeline_mode = #tpu.pipeline_mode<synchronous>, transform_indices = @transform_3, window_bounds = array<i64: 8, 4>}, {pipeline_mode = #tpu.pipeline_mode<synchronous>, transform_indices = @transform_4, window_bounds = array<i64: 4, 8>}, {pipeline_mode = #tpu.pipeline_mode<synchronous>, transform_indices = @transform_5, window_bounds = array<i64: 8, 2>}, {pipeline_mode = #tpu.pipeline_mode<synchronous>, transform_indices = @transform_6, window_bounds = array<i64: 1, 1>}, {pipeline_mode = #tpu.pipeline_mode<synchronous>, transform_indices = @transform_7, window_bounds = array<i64: 1, 2>}]} {
    %c0 = arith.constant 0 : index
    %c0_0 = arith.constant 0 : index
    %0 = vector.load %arg1[%c0, %c0_0] : memref<64x512xbf16, #tpu.memory_space<vmem>>, vector<64x512xbf16>
    %c0_1 = arith.constant 0 : index
    %c0_2 = arith.constant 0 : index
    %c0_3 = arith.constant 0 : index
    %1 = vector.load %arg2[%c0_1, %c0_2, %c0_3] : memref<4x512x8xbf16, #tpu.memory_space<vmem>>, vector<1x512x8xbf16>
    %2 = vector.shape_cast %1 : vector<1x512x8xbf16> to vector<512x8xbf16>
    %cst = arith.constant dense<0.000000e+00> : vector<64x8xf32>
    %3 = tpu.matmul %0, %2, %cst {dimension_numbers = #tpu.dot_dimension_numbers<[1], [0], [0], [1], [0, 0, 1, 1], [], []>} : vector<64x512xbf16>, vector<512x8xbf16>, vector<64x8xf32> -> vector<64x8xf32>
    %c0_4 = arith.constant 0 : index
    %c0_5 = arith.constant 0 : index
    %4 = vector.load %arg1[%c0_4, %c0_5] : memref<64x512xbf16, #tpu.memory_space<vmem>>, vector<64x512xbf16>
    %c1 = arith.constant 1 : index
    %c0_6 = arith.constant 0 : index
    %c0_7 = arith.constant 0 : index
    %5 = vector.load %arg2[%c1, %c0_6, %c0_7] : memref<4x512x8xbf16, #tpu.memory_space<vmem>>, vector<1x512x8xbf16>
    %6 = vector.shape_cast %5 : vector<1x512x8xbf16> to vector<512x8xbf16>
    %cst_8 = arith.constant dense<0.000000e+00> : vector<64x8xf32>
    %7 = tpu.matmul %4, %6, %cst_8 {dimension_numbers = #tpu.dot_dimension_numbers<[1], [0], [0], [1], [0, 0, 1, 1], [], []>} : vector<64x512xbf16>, vector<512x8xbf16>, vector<64x8xf32> -> vector<64x8xf32>
    %8 = arith.maximumf %3, %7 : vector<64x8xf32>
    %c0_9 = arith.constant 0 : index
    %c0_10 = arith.constant 0 : index
    %9 = vector.load %arg1[%c0_9, %c0_10] : memref<64x512xbf16, #tpu.memory_space<vmem>>, vector<64x512xbf16>
    %c2 = arith.constant 2 : index
    %c0_11 = arith.constant 0 : index
    %c0_12 = arith.constant 0 : index
    %10 = vector.load %arg2[%c2, %c0_11, %c0_12] : memref<4x512x8xbf16, #tpu.memory_space<vmem>>, vector<1x512x8xbf16>
    %11 = vector.shape_cast %10 : vector<1x512x8xbf16> to vector<512x8xbf16>
    %cst_13 = arith.constant dense<0.000000e+00> : vector<64x8xf32>
    %12 = tpu.matmul %9, %11, %cst_13 {dimension_numbers = #tpu.dot_dimension_numbers<[1], [0], [0], [1], [0, 0, 1, 1], [], []>} : vector<64x512xbf16>, vector<512x8xbf16>, vector<64x8xf32> -> vector<64x8xf32>
    %13 = arith.maximumf %8, %12 : vector<64x8xf32>
    %c0_14 = arith.constant 0 : index
    %c0_15 = arith.constant 0 : index
    %14 = vector.load %arg1[%c0_14, %c0_15] : memref<64x512xbf16, #tpu.memory_space<vmem>>, vector<64x512xbf16>
    %c3 = arith.constant 3 : index
    %c0_16 = arith.constant 0 : index
    %c0_17 = arith.constant 0 : index
    %15 = vector.load %arg2[%c3, %c0_16, %c0_17] : memref<4x512x8xbf16, #tpu.memory_space<vmem>>, vector<1x512x8xbf16>
    %16 = vector.shape_cast %15 : vector<1x512x8xbf16> to vector<512x8xbf16>
    %cst_18 = arith.constant dense<0.000000e+00> : vector<64x8xf32>
    %17 = tpu.matmul %14, %16, %cst_18 {dimension_numbers = #tpu.dot_dimension_numbers<[1], [0], [0], [1], [0, 0, 1, 1], [], []>} : vector<64x512xbf16>, vector<512x8xbf16>, vector<64x8xf32> -> vector<64x8xf32>
    %18 = arith.maximumf %13, %17 : vector<64x8xf32>
    %cst_19 = arith.constant 2.000000e-01 : f32
    %19 = vector.broadcast %cst_19 : f32 to vector<64x8xf32>
    %20 = arith.mulf %19, %18 : vector<64x8xf32>
    %21 = arith.maximumf %18, %20 : vector<64x8xf32>
    %c0_20 = arith.constant 0 : index
    %c0_21 = arith.constant 0 : index
    %22 = vector.load %arg4[%c0_20, %c0_21] : memref<8x4xf32, #tpu.memory_space<vmem>>, vector<8x4xf32>
    %cst_22 = arith.constant dense<0.000000e+00> : vector<64x4xf32>
    %23 = tpu.matmul %21, %22, %cst_22 {dimension_numbers = #tpu.dot_dimension_numbers<[1], [0], [0], [1], [0, 0, 1, 1], [], []>} : vector<64x8xf32>, vector<8x4xf32>, vector<64x4xf32> -> vector<64x4xf32>
    %c0_23 = arith.constant 0 : index
    %c0_24 = arith.constant 0 : index
    %24 = vector.load %arg5[%c0_23, %c0_24] : memref<4x8xf32, #tpu.memory_space<vmem>>, vector<4x8xf32>
    %cst_25 = arith.constant dense<0.000000e+00> : vector<64x8xf32>
    %25 = tpu.matmul %23, %24, %cst_25 {dimension_numbers = #tpu.dot_dimension_numbers<[1], [0], [0], [1], [0, 0, 1, 1], [], []>} : vector<64x4xf32>, vector<4x8xf32>, vector<64x8xf32> -> vector<64x8xf32>
    %26 = arith.subf %21, %25 : vector<64x8xf32>
    %27 = arith.mulf %26, %26 : vector<64x8xf32>
    %c0_26 = arith.constant 0 : index
    %c0_27 = arith.constant 0 : index
    %28 = vector.load %arg4[%c0_26, %c0_27] : memref<8x4xf32, #tpu.memory_space<vmem>>, vector<8x4xf32>
    %cst_28 = arith.constant dense<0.000000e+00> : vector<64x4xf32>
    %29 = tpu.matmul %27, %28, %cst_28 {dimension_numbers = #tpu.dot_dimension_numbers<[1], [0], [0], [1], [0, 0, 1, 1], [], []>} : vector<64x8xf32>, vector<8x4xf32>, vector<64x4xf32> -> vector<64x4xf32>
    %cst_29 = arith.constant 9.99999993E-9 : f32
    %30 = vector.broadcast %cst_29 : f32 to vector<64x4xf32>
    %31 = arith.addf %29, %30 : vector<64x4xf32>
    %32 = math.sqrt %31 : vector<64x4xf32>
    %33 = vector.shape_cast %32 : vector<64x4xf32> to vector<1x64x4xf32>
    %cst_30 = arith.constant dense<0.000000e+00> : vector<1xf32>
    %34 = vector.multi_reduction <add>, %33, %cst_30 [1, 2] : vector<1x64x4xf32> to vector<1xf32>
    %35 = vector.shape_cast %34 : vector<1xf32> to vector<1x1x1xf32>
    %36 = vector.extract %35[0, 0, 0] : f32 from vector<1x1x1xf32>
    %cst_31 = arith.constant 2.560000e+02 : f32
    %37 = arith.divf %36, %cst_31 : f32
    %c0_32 = arith.constant 0 : index
    %c0_33 = arith.constant 0 : index
    %38 = vector.load %arg3[%c0_32, %c0_33] : memref<64x4xf32, #tpu.memory_space<vmem>>, vector<64x4xf32>
    %c0_34 = arith.constant 0 : index
    %c0_35 = arith.constant 0 : index
    %39 = vector.load %arg5[%c0_34, %c0_35] : memref<4x8xf32, #tpu.memory_space<vmem>>, vector<4x8xf32>
    %cst_36 = arith.constant dense<0.000000e+00> : vector<64x8xf32>
    %40 = tpu.matmul %38, %39, %cst_36 {dimension_numbers = #tpu.dot_dimension_numbers<[1], [0], [0], [1], [0, 0, 1, 1], [], []>} : vector<64x4xf32>, vector<4x8xf32>, vector<64x8xf32> -> vector<64x8xf32>
    %41 = arith.mulf %21, %40 : vector<64x8xf32>
    %c0_37 = arith.constant 0 : index
    %c0_38 = arith.constant 0 : index
    %42 = vector.load %arg6[%c0_37, %c0_38] : memref<8x2xf32, #tpu.memory_space<vmem>>, vector<8x2xf32>
    %cst_39 = arith.constant dense<0.000000e+00> : vector<64x2xf32>
    %43 = tpu.matmul %41, %42, %cst_39 {dimension_numbers = #tpu.dot_dimension_numbers<[1], [0], [0], [1], [0, 0, 1, 1], [], []>} : vector<64x8xf32>, vector<8x2xf32>, vector<64x2xf32> -> vector<64x2xf32>
    %cst_40 = arith.constant dense<0.000000e+00> : vector<2xf32>
    %44 = vector.multi_reduction <add>, %43, %cst_40 [0] : vector<64x2xf32> to vector<2xf32>
    %45 = vector.shape_cast %44 : vector<2xf32> to vector<1x2xf32>
    %c0_41 = arith.constant 0 : index
    %c0_42 = arith.constant 0 : index
    %46 = vector.load %arg7[%c0_41, %c0_42] : memref<1x1xf32, #tpu.memory_space<vmem>>, vector<1x1xf32>
    %47 = vector.broadcast %37 : f32 to vector<1x1xf32>
    %48 = arith.mulf %47, %46 : vector<1x1xf32>
    %49 = vector.broadcast %48 : vector<1x1xf32> to vector<1x2xf32>
    %50 = arith.addf %45, %49 : vector<1x2xf32>
    %51 = arith.negf %50 : vector<1x2xf32>
    %52 = math.exp %51 : vector<1x2xf32>
    %cst_43 = arith.constant 1.000000e+00 : f32
    %53 = vector.broadcast %cst_43 : f32 to vector<1x2xf32>
    %54 = arith.addf %53, %52 : vector<1x2xf32>
    %55 = arith.divf %53, %54 : vector<1x2xf32>
    %c0_44 = arith.constant 0 : index
    %c0_45 = arith.constant 0 : index
    %56 = vector.load %arg8[%c0_44, %c0_45] : memref<1x2xf32, #tpu.memory_space<vmem>>, vector<1x2xf32>
    tpu.vector_store %arg8[%c0_44, %c0_45], %55 {strides = array<i32>} : memref<1x2xf32, #tpu.memory_space<vmem>>, vector<1x2xf32>,
    return
  }
  func.func @transform_0(%arg0: i32) -> (i32, i32) {
    %c0_i32 = arith.constant 0 : i32
    %c0_i32_0 = arith.constant 0 : i32
    %c0_i32_1 = arith.constant 0 : i32
    return %c0_i32, %c0_i32_0 : i32, i32
  }
  func.func @transform_1(%arg0: i32) -> (i32, i32, i32) {
    %c0_i32 = arith.constant 0 : i32
    %c0_i32_0 = arith.constant 0 : i32
    %c0_i32_1 = arith.constant 0 : i32
    %c0_i32_2 = arith.constant 0 : i32
    return %c0_i32, %c0_i32_0, %c0_i32_1 : i32, i32, i32
  }
  func.func @transform_2(%arg0: i32) -> (i32, i32) {
    %c0_i32 = arith.constant 0 : i32
    %c0_i32_0 = arith.constant 0 : i32
    %c0_i32_1 = arith.constant 0 : i32
    return %c0_i32, %c0_i32_0 : i32, i32
  }
  func.func @transform_3(%arg0: i32) -> (i32, i32) {
    %c0_i32 = arith.constant 0 : i32
    %c0_i32_0 = arith.constant 0 : i32
    %c0_i32_1 = arith.constant 0 : i32
    return %c0_i32, %c0_i32_0 : i32, i32
  }
  func.func @transform_4(%arg0: i32) -> (i32, i32) {
    %c0_i32 = arith.constant 0 : i32
    %c0_i32_0 = arith.constant 0 : i32
    %c0_i32_1 = arith.constant 0 : i32
    return %c0_i32, %c0_i32_0 : i32, i32
  }
  func.func @transform_5(%arg0: i32) -> (i32, i32) {
    %c0_i32 = arith.constant 0 : i32
    %c0_i32_0 = arith.constant 0 : i32
    %c0_i32_1 = arith.constant 0 : i32
    return %c0_i32, %c0_i32_0 : i32, i32
  }
  func.func @transform_6(%arg0: i32) -> (i32, i32) {
    %c0_i32 = arith.constant 0 : i32
    %c0_i32_0 = arith.constant 0 : i32
    %c0_i32_1 = arith.constant 0 : i32
    return %c0_i32, %c0_i32_0 : i32, i32
  }
  func.func @transform_7(%arg0: i32) -> (i32, i32) {
    %c0_i32 = arith.constant 0 : i32
    %c0_i32_0 = arith.constant 0 : i32
    %c0_i32_1 = arith.constant 0 : i32
    return %c0_i32, %c0_i32_0 : i32, i32
  }
}

</mosaic_0001>

<bundles_post_ra>
// kernel: discriminator_forward.4
= control target key start
LH: loop header
LB: loop body
LE: loop exit
PB: predicated region body
PF: predicated region fallthrough
CT: control target
= control target key end

     0   :  { %v814_v3 = vmov 0   ;;  %vm301_vm0 = vcmask 392192   ;;  %s1027_s1 = inlined_call_operand.vmem [shape: bf16[48,2048], index: 1, kind: input, shape index: {}]   ;;  %s1028_s0 = inlined_call_operand.vmem [shape: bf16[8,48], index: 0, kind: input, shape index: {}]   ;;  %s1029_s2 = inlined_call_operand.vmem [shape: bf16[8,2048], index: 2, kind: output, shape index: {}]  }
   0x1   :  { %v13_v0 = vld [vmem:[%s1027_s1] sm:$0xff]  ;;  %v14_v2 = vld [vmem:[%s1027_s1 + $0x8] sm:$0xff]  ;;  %337 = vmatprep.mubr.bf16.mxu0 %v814_v3  ;;  %378 = vmatprep.mubr.bf16.mxu1 %v814_v3  ;;  %v15_v23 = vld [vmem:[%s1027_s1 + $0x10] sm:$0xff] }
   0x2   :  { %v21_v1 = vld [vmem:[%s1027_s1 + $0x40] sm:$0xff]  ;;  %v22_v5 = vld [vmem:[%s1027_s1 + $0x48] sm:$0xff]  ;;  %v23_v24 = vld [vmem:[%s1027_s1 + $0x50] sm:$0xff] }
   0x3   :  { %v742_v4 = vcombine.high %v13_v0, %v21_v1  ;;  %v741_v6 = vcombine.low %v13_v0, %v21_v1  ;;  %v29_v7 = vld [vmem:[%s1027_s1 + $0x80] sm:$0xff]  ;;  %v744_v9 = vcombine.high %v14_v2, %v22_v5  ;;  %v743_v10 = vcombine.low %v14_v2, %v22_v5  ;;  %v30_v12 = vld [vmem:[%s1027_s1 + $0x88] sm:$0xff]  ;;  %v16_v25 = vld [vmem:[%s1027_s1 + $0x18] sm:$0xff] }
   0x4   :  { %v37_v8 = vld [vmem:[%s1027_s1 + $0xc0] sm:$0xff]  ;;  %v38_v13 = vld [vmem:[%s1027_s1 + $0xc8] sm:$0xff]  ;;  %v24_v26 = vld [vmem:[%s1027_s1 + $0x58] sm:$0xff]  ;;  %v746_v29 = vcombine.high %v15_v23, %v23_v24  ;;  %v745_v36 = vcombine.low %v15_v23, %v23_v24 }
   0x5   :  { %v758_v11 = vcombine.high %v29_v7, %v37_v8  ;;  %v45_v14 = vld [vmem:[%s1027_s1 + $0x100] sm:$0xff]  ;;  %305 = vmatprep.subr.bf16.mxu0 %v742_v4  ;;  %v760_v15 = vcombine.high %v30_v12, %v38_v13  ;;  %v46_v17 = vld [vmem:[%s1027_s1 + $0x108] sm:$0xff]  ;;  %346 = vmatprep.subr.bf16.mxu1 %v744_v9  ;;  %v757_v19 = vcombine.low %v29_v7, %v37_v8  ;;  %v31_v31 = vld [vmem:[%s1027_s1 + $0x90] sm:$0xff] }
   0x6   :  { %v53_v16 = vld [vmem:[%s1027_s1 + $0x140] sm:$0xff]  ;;  %v54_v18 = vld [vmem:[%s1027_s1 + $0x148] sm:$0xff]  ;;  %306 = vmatpush1.bf16.msra.mxu0 %v741_v6  ;;  %347 = vmatpush1.bf16.msra.mxu1 %v743_v10  ;;  %v759_v20 = vcombine.low %v30_v12, %v38_v13  ;;  %v748_v30 = vcombine.high %v16_v25, %v24_v26  ;;  %v39_v32 = vld [vmem:[%s1027_s1 + $0xd0] sm:$0xff]  ;;  %v747_v37 = vcombine.low %v16_v25, %v24_v26 }
   0x7   :  { %307 = vmatprep.subr.bf16.mxu0 %v758_v11  ;;  %v774_v21 = vcombine.high %v45_v14, %v53_v16  ;;  %348 = vmatprep.subr.bf16.mxu1 %v760_v15  ;;  %v776_v22 = vcombine.high %v46_v17, %v54_v18  ;;  %v773_v27 = vcombine.low %v45_v14, %v53_v16  ;;  %v32_v33 = vld [vmem:[%s1027_s1 + $0x98] sm:$0xff]  ;;  %v895_v35 = vld [vmem:[%s1028_s0] sm:$0xf]  ;;  %v47_v40 = vld [vmem:[%s1027_s1 + $0x110] sm:$0xff] }
   0x8   :  { %v775_v28 = vcombine.low %v46_v17, %v54_v18  ;;  %v40_v34 = vld [vmem:[%s1027_s1 + $0xd8] sm:$0xff]  ;;  %v762_v38 = vcombine.high %v31_v31, %v39_v32  ;;  %v55_v41 = vld [vmem:[%s1027_s1 + $0x150] sm:$0xff]  ;;  %v761_v44 = vcombine.low %v31_v31, %v39_v32  ;;  %v17_v48 = vld [vmem:[%s1027_s1 + $0x20] sm:$0xff] }
   0x9   :  { %v764_v39 = vcombine.high %v32_v33, %v40_v34  ;;  %v48_v42 = vld [vmem:[%s1027_s1 + $0x118] sm:$0xff]  ;;  %v763_v45 = vcombine.low %v32_v33, %v40_v34  ;;  %v778_v46 = vcombine.high %v47_v40, %v55_v41  ;;  %v25_v49 = vld [vmem:[%s1027_s1 + $0x60] sm:$0xff]  ;;  %v18_v50 = vld [vmem:[%s1027_s1 + $0x28] sm:$0xff]  ;;  %v777_v52 = vcombine.low %v47_v40, %v55_v41 }
   0xa   :  { %308 = vmatpush1.bf16.msra.mxu0 %v757_v19  ;;  %349 = vmatpush1.bf16.msra.mxu1 %v759_v20  ;;  %v56_v43 = vld [vmem:[%s1027_s1 + $0x158] sm:$0xff]  ;;  %v26_v51 = vld [vmem:[%s1027_s1 + $0x68] sm:$0xff]  ;;  %v750_v54 = vcombine.high %v17_v48, %v25_v49  ;;  %v33_v56 = vld [vmem:[%s1027_s1 + $0xa0] sm:$0xff]  ;;  %v749_v60 = vcombine.low %v17_v48, %v25_v49 }
   0xb   :  { %309 = vmatprep.subr.bf16.mxu0 %v774_v21  ;;  %350 = vmatprep.subr.bf16.mxu1 %v776_v22  ;;  %v780_v47 = vcombine.high %v48_v42, %v56_v43  ;;  %v779_v53 = vcombine.low %v48_v42, %v56_v43  ;;  %v752_v55 = vcombine.high %v18_v50, %v26_v51  ;;  %v41_v57 = vld [vmem:[%s1027_s1 + $0xe0] sm:$0xff]  ;;  %v34_v58 = vld [vmem:[%s1027_s1 + $0xa8] sm:$0xff]  ;;  %v19_v9 = vld [vmem:[%s1027_s1 + $0x30] sm:$0xff] }
   0xc   :  { %v42_v59 = vld [vmem:[%s1027_s1 + $0xe8] sm:$0xff]  ;;  %v751_v61 = vcombine.low %v18_v50, %v26_v51  ;;  %v766_v62 = vcombine.high %v33_v56, %v41_v57  ;;  %v49_v0 = vld [vmem:[%s1027_s1 + $0x120] sm:$0xff]  ;;  %v765_v5 = vcombine.low %v33_v56, %v41_v57  ;;  %v27_v10 = vld [vmem:[%s1027_s1 + $0x70] sm:$0xff] }
   0xd   :  { %v768_v63 = vcombine.high %v34_v58, %v42_v59  ;;  %v57_v1 = vld [vmem:[%s1027_s1 + $0x160] sm:$0xff]  ;;  %v50_v2 = vld [vmem:[%s1027_s1 + $0x128] sm:$0xff]  ;;  %v767_v6 = vcombine.low %v34_v58, %v42_v59  ;;  %v20_v11 = vld [vmem:[%s1027_s1 + $0x38] sm:$0xff]  ;;  %v754_v15 = vcombine.high %v19_v9, %v27_v10  ;;  %v753_v21 = vcombine.low %v19_v9, %v27_v10 }
   0xe   :  { %310 = vmatpush1.bf16.msra.mxu0 %v773_v27  ;;  %351 = vmatpush1.bf16.msra.mxu1 %v775_v28  ;;  %v58_v4 = vld [vmem:[%s1027_s1 + $0x168] sm:$0xff]  ;;  %v782_v7 = vcombine.high %v49_v0, %v57_v1  ;;  %v28_v12 = vld [vmem:[%s1027_s1 + $0x78] sm:$0xff]  ;;  %v781_v13 = vcombine.low %v49_v0, %v57_v1  ;;  %v35_v17 = vld [vmem:[%s1027_s1 + $0xb0] sm:$0xff] }
   0xf   :  { %387 = vmatprep.subr.bf16.mxu0 %v746_v29  ;;  %428 = vmatprep.subr.bf16.mxu1 %v748_v30  ;;  %v784_v8 = vcombine.high %v50_v2, %v58_v4  ;;  %v783_v14 = vcombine.low %v50_v2, %v58_v4  ;;  %v756_v16 = vcombine.high %v20_v11, %v28_v12  ;;  %v43_v18 = vld [vmem:[%s1027_s1 + $0xf0] sm:$0xff]  ;;  %v36_v19 = vld [vmem:[%s1027_s1 + $0xb8] sm:$0xff] }
  0x10   :  { %v44_v20 = vld [vmem:[%s1027_s1 + $0xf8] sm:$0xff]  ;;  %v755_v22 = vcombine.low %v20_v11, %v28_v12  ;;  %v770_v23 = vcombine.high %v35_v17, %v43_v18  ;;  %v51_v25 = vld [vmem:[%s1027_s1 + $0x130] sm:$0xff]  ;;  %v769_v29 = vcombine.low %v35_v17, %v43_v18 }
  0x11   :  { %789 = vmatmul.mubr.msk.bf16.vlgmr.msra.gmra.mrb[0].mxu0 %vm301_vm0, %v895_v35  ;;  %790 = vmatmul.mubr.msk.bf16.vlgmr.msra.gmra.mrb[0].mxu1 %vm301_vm0, %v895_v35  ;;  %v772_v24 = vcombine.high %v36_v19, %v44_v20  ;;  %v59_v26 = vld [vmem:[%s1027_s1 + $0x170] sm:$0xff]  ;;  %v52_v27 = vld [vmem:[%s1027_s1 + $0x138] sm:$0xff]  ;;  %v771_v30 = vcombine.low %v36_v19, %v44_v20 }
  0x12   :  { %388 = vmatpush1.bf16.msra.mxu0 %v745_v36  ;;  %429 = vmatpush1.bf16.msra.mxu1 %v747_v37  ;;  %v60_v28 = vld [vmem:[%s1027_s1 + $0x178] sm:$0xff]  ;;  %v786_v31 = vcombine.high %v51_v25, %v59_v26  ;;  %v785_v33 = vcombine.low %v51_v25, %v59_v26 }
  0x13   :  { %389 = vmatprep.subr.bf16.mxu0 %v762_v38  ;;  %430 = vmatprep.subr.bf16.mxu1 %v764_v39  ;;  %v788_v32 = vcombine.high %v52_v27, %v60_v28  ;;  %v787_v34 = vcombine.low %v52_v27, %v60_v28 }
  0x14   :  { %419 = vmatprep.mubr.bf16.mxu0 %v814_v3  ;;  %460 = vmatprep.mubr.bf16.mxu1 %v814_v3 }
  0x16   :  { %390 = vmatpush1.bf16.msra.mxu0 %v761_v44  ;;  %431 = vmatpush1.bf16.msra.mxu1 %v763_v45 }
  0x17   :  { %391 = vmatprep.subr.bf16.mxu0 %v778_v46  ;;  %432 = vmatprep.subr.bf16.mxu1 %v780_v47 }
  0x1a   :  { %392 = vmatpush1.bf16.msra.mxu0 %v777_v52  ;;  %433 = vmatpush1.bf16.msra.mxu1 %v779_v53 }
  0x1b   :  { %469 = vmatprep.subr.bf16.mxu0 %v750_v54  ;;  %510 = vmatprep.subr.bf16.mxu1 %v752_v55 }
  0x1d   :  { %791 = vmatmul.mubr.msk.bf16.vlgmr.msra.gmra.mrb[4].mxu0 %vm301_vm0, %v895_v35  ;;  %792 = vmatmul.mubr.msk.bf16.vlgmr.msra.gmra.mrb[4].mxu1 %vm301_vm0, %v895_v35 }
  0x1e   :  { %470 = vmatpush1.bf16.msra.mxu0 %v749_v60  ;;  %511 = vmatpush1.bf16.msra.mxu1 %v751_v61 }
  0x1f   :  { %471 = vmatprep.subr.bf16.mxu0 %v766_v62  ;;  %512 = vmatprep.subr.bf16.mxu1 %v768_v63 }
  0x20   :  { %501 = vmatprep.mubr.bf16.mxu0 %v814_v3  ;;  %542 = vmatprep.mubr.bf16.mxu1 %v814_v3 }
  0x22   :  { %472 = vmatpush1.bf16.msra.mxu0 %v765_v5  ;;  %513 = vmatpush1.bf16.msra.mxu1 %v767_v6 }
  0x23   :  { %473 = vmatprep.subr.bf16.mxu0 %v782_v7  ;;  %514 = vmatprep.subr.bf16.mxu1 %v784_v8 }
  0x26   :  { %474 = vmatpush1.bf16.msra.mxu0 %v781_v13  ;;  %515 = vmatpush1.bf16.msra.mxu1 %v783_v14 }
  0x27   :  { %551 = vmatprep.subr.bf16.mxu0 %v754_v15  ;;  %592 = vmatprep.subr.bf16.mxu1 %v756_v16 }
  0x29   :  { %793 = vmatmul.mubr.msk.bf16.vlgmr.msra.gmra.mrb[8].mxu0 %vm301_vm0, %v895_v35  ;;  %794 = vmatmul.mubr.msk.bf16.vlgmr.msra.gmra.mrb[8].mxu1 %vm301_vm0, %v895_v35 }
  0x2a   :  { %552 = vmatpush1.bf16.msra.mxu0 %v753_v21  ;;  %593 = vmatpush1.bf16.msra.mxu1 %v755_v22 }
  0x2b   :  { %553 = vmatprep.subr.bf16.mxu0 %v770_v23  ;;  %594 = vmatprep.subr.bf16.mxu1 %v772_v24 }
  0x2c   :  { %583 = vmatprep.mubr.bf16.mxu0 %v814_v3  ;;  %624 = vmatprep.mubr.bf16.mxu1 %v814_v3 }
  0x2e   :  { %554 = vmatpush1.bf16.msra.mxu0 %v769_v29  ;;  %595 = vmatpush1.bf16.msra.mxu1 %v771_v30 }
  0x2f   :  { %555 = vmatprep.subr.bf16.mxu0 %v786_v31  ;;  %596 = vmatprep.subr.bf16.mxu1 %v788_v32 }
  0x32   :  { %556 = vmatpush1.bf16.msra.mxu0 %v785_v33  ;;  %597 = vmatpush1.bf16.msra.mxu1 %v787_v34 }
  0x35   :  { %795 = vmatmul.mubr.msk.bf16.vlgmr.msra.gmra.mrb[12].mxu0 %vm301_vm0, %v895_v35  ;;  %796 = vmatmul.mubr.msk.bf16.vlgmr.msra.gmra.mrb[12].mxu1 %vm301_vm0, %v895_v35 }
  0xe4   :  { %v339_v36 = vpop.f32.mrb[0].mxu0  ;;  %v380_v38 = vpop.f32.mrb[0].mxu1 }
  0xe5   :  { %v633_v37 = vmul.f32 0.2, %v339_v36  ;;  %v341_v39 = vpop.f32.mrb[1].mxu0  ;;  %v635_v40 = vmul.f32 0.2, %v380_v38  ;;  %v382_v41 = vpop.f32.mrb[1].mxu1 }
  0xe6   :  { %v634_v3 = vmul.f32 0.2, %v341_v39  ;;  %v343_v42 = vpop.f32.mrb[2].mxu0  ;;  %v636_v44 = vmul.f32 0.2, %v382_v41  ;;  %v384_v45 = vpop.f32.mrb[2].mxu1 }
  0xe7   :  { %v649_v43 = vmax.f32 %v339_v36, %v633_v37  ;;  %v344_v46 = vpop.f32.mrb[3].mxu0  ;;  %v651_v47 = vmax.f32 %v380_v38, %v635_v40  ;;  %v385_v49 = vpop.f32.mrb[3].mxu1 }
  0xe8   :  { %v650_v48 = vmax.f32 %v341_v39, %v634_v3  ;;  %v652_v50 = vmax.f32 %v382_v41, %v636_v44 }
  0xea   :  { %v805_v51 = vpack.c.bf16 %v650_v48, %v649_v43  ;;  %v806_v52 = vpack.c.bf16 %v652_v50, %v651_v47 }
  0xec   :  { %729 = vst [vmem:[%s1029_s2] sm:$0xff] %v805_v51  ;;  %730 = vst [vmem:[%s1029_s2 + $0x8] sm:$0xff] %v806_v52 }
  0xf0   :  { %v421_v35 = vpop.f32.mrb[4].mxu0  ;;  %v462_v54 = vpop.f32.mrb[4].mxu1 }
  0xf1   :  { %v637_v53 = vmul.f32 0.2, %v421_v35  ;;  %v423_v55 = vpop.f32.mrb[5].mxu0  ;;  %v639_v56 = vmul.f32 0.2, %v462_v54  ;;  %v464_v58 = vpop.f32.mrb[5].mxu1 }
  0xf2   :  { %v638_v57 = vmul.f32 0.2, %v423_v55  ;;  %v425_v59 = vpop.f32.mrb[6].mxu0  ;;  %v640_v61 = vmul.f32 0.2, %v464_v58  ;;  %v466_v62 = vpop.f32.mrb[6].mxu1 }
  0xf3   :  { %v653_v60 = vmax.f32 %v421_v35, %v637_v53  ;;  %v426_v63 = vpop.f32.mrb[7].mxu0  ;;  %v655_v0 = vmax.f32 %v462_v54, %v639_v56  ;;  %v467_v2 = vpop.f32.mrb[7].mxu1 }
  0xf4   :  { %v654_v1 = vmax.f32 %v423_v55, %v638_v57  ;;  %v656_v4 = vmax.f32 %v464_v58, %v640_v61 }
  0xf6   :  { %v807_v5 = vpack.c.bf16 %v654_v1, %v653_v60  ;;  %v808_v6 = vpack.c.bf16 %v656_v4, %v655_v0 }
  0xf8   :  { %731 = vst [vmem:[%s1029_s2 + $0x10] sm:$0xff] %v807_v5  ;;  %732 = vst [vmem:[%s1029_s2 + $0x18] sm:$0xff] %v808_v6 }
  0xfc   :  { %v503_v7 = vpop.f32.mrb[8].mxu0  ;;  %v544_v9 = vpop.f32.mrb[8].mxu1 }
  0xfd   :  { %v641_v8 = vmul.f32 0.2, %v503_v7  ;;  %v505_v10 = vpop.f32.mrb[9].mxu0  ;;  %v643_v11 = vmul.f32 0.2, %v544_v9  ;;  %v546_v13 = vpop.f32.mrb[9].mxu1 }
  0xfe   :  { %v642_v12 = vmul.f32 0.2, %v505_v10  ;;  %v507_v14 = vpop.f32.mrb[10].mxu0  ;;  %v644_v16 = vmul.f32 0.2, %v546_v13  ;;  %v548_v17 = vpop.f32.mrb[10].mxu1 }
  0xff   :  { %v657_v15 = vmax.f32 %v503_v7, %v641_v8  ;;  %v508_v18 = vpop.f32.mrb[11].mxu0  ;;  %v659_v19 = vmax.f32 %v544_v9, %v643_v11  ;;  %v549_v21 = vpop.f32.mrb[11].mxu1 }
 0x100   :  { %v658_v20 = vmax.f32 %v505_v10, %v642_v12  ;;  %v660_v22 = vmax.f32 %v546_v13, %v644_v16 }
 0x102   :  { %v809_v23 = vpack.c.bf16 %v658_v20, %v657_v15  ;;  %v810_v24 = vpack.c.bf16 %v660_v22, %v659_v19 }
 0x104   :  { %733 = vst [vmem:[%s1029_s2 + $0x20] sm:$0xff] %v809_v23  ;;  %734 = vst [vmem:[%s1029_s2 + $0x28] sm:$0xff] %v810_v24 }
 0x108   :  { %v585_v25 = vpop.f32.mrb[12].mxu0  ;;  %v626_v27 = vpop.f32.mrb[12].mxu1 }
 0x109   :  { %v645_v26 = vmul.f32 0.2, %v585_v25  ;;  %v587_v28 = vpop.f32.mrb[13].mxu0  ;;  %v647_v29 = vmul.f32 0.2, %v626_v27  ;;  %v628_v31 = vpop.f32.mrb[13].mxu1 }
 0x10a   :  { %v646_v30 = vmul.f32 0.2, %v587_v28  ;;  %v589_v32 = vpop.f32.mrb[14].mxu0  ;;  %v648_v34 = vmul.f32 0.2, %v628_v31  ;;  %v630_v36 = vpop.f32.mrb[14].mxu1 }
 0x10b   :  { %v661_v33 = vmax.f32 %v585_v25, %v645_v26  ;;  %v590_v37 = vpop.f32.mrb[15].mxu0  ;;  %v663_v38 = vmax.f32 %v626_v27, %v647_v29  ;;  %v631_v40 = vpop.f32.mrb[15].mxu1 }
 0x10c   :  { %v662_v39 = vmax.f32 %v587_v28, %v646_v30  ;;  %v664_v3 = vmax.f32 %v628_v31, %v648_v34 }
 0x10e   :  { %v811_v41 = vpack.c.bf16 %v662_v39, %v661_v33  ;;  %v812_v42 = vpack.c.bf16 %v664_v3, %v663_v38 }
 0x110   :  { %735 = vst [vmem:[%s1029_s2 + $0x30] sm:$0xff] %v811_v41  ;;  %736 = vst [vmem:[%s1029_s2 + $0x38] sm:$0xff] %v812_v42 }

// kernel: discriminator_forward.5
= control target key start
LH: loop header
LB: loop body
LE: loop exit
PB: predicated region body
PF: predicated region fallthrough
CT: control target
= control target key end

     0   :  { %v542_v1 = vmov 0   ;;  %s691_s1 = inlined_call_operand.vmem [shape: bf16[128,512], index: 1, kind: input, shape index: {}]   ;;  %s692_s0 = inlined_call_operand.vmem [shape: bf16[16,128], index: 0, kind: input, shape index: {}]   ;;  %s693_s2 = inlined_call_operand.vmem [shape: f32[16,1], index: 2, kind: input, shape index: {}]   ;;  %s694_s3 = inlined_call_operand.vmem [shape: f32[16,1], index: 3, kind: input, shape index: {}]   ;;  %s695_s4 = inlined_call_operand.vmem [shape: bf16[16,512], index: 4, kind: output, shape index: {}]  }
   0x1   :  { %v489_v0 = vld [vmem:[%s691_s1 + $0x4] ss:$16 sps:$4 sm:$0xff]   ;;  %250 = vmatprep.mubr.bf16.mxu0 %v542_v1  ;;  %293 = vmatprep.mubr.bf16.mxu1 %v542_v1  ;;  %v491_v2 = vld [vmem:[%s691_s1 + $0xc] ss:$16 sps:$4 sm:$0xff]   ;;  %v493_v3 = vld [vmem:[%s691_s1] ss:$16 sps:$4 sm:$0xff]  }
   0x2   :  { %488 = vset.pattern.permute.xlu1 %v542_v1  ;;  %487 = vset.pattern.permute.xlu0 %v542_v1  ;;  %v494_v4 = vld [vmem:[%s691_s1 + $0x8] ss:$16 sps:$4 sm:$0xff]   ;;  %v495_v5 = vld [vmem:[%s691_s1 + $0x24] ss:$16 sps:$4 sm:$0xff]   ;;  %v497_v6 = vld [vmem:[%s691_s1 + $0x2c] ss:$16 sps:$4 sm:$0xff]  }
   0x3   :  { %218 = vmatprep.subr.bf16.mxu0 %v489_v0  ;;  %261 = vmatprep.subr.bf16.mxu1 %v491_v2  ;;  %v499_v7 = vld [vmem:[%s691_s1 + $0x20] ss:$16 sps:$4 sm:$0xff]   ;;  %v500_v8 = vld [vmem:[%s691_s1 + $0x28] ss:$16 sps:$4 sm:$0xff]   ;;  %v501_v9 = vld [vmem:[%s691_s1 + $0x44] ss:$16 sps:$4 sm:$0xff]  }
   0x4   :  { %219 = vmatpush1.bf16.msra.mxu0 %v493_v3  ;;  %262 = vmatpush1.bf16.msra.mxu1 %v494_v4  ;;  %v503_v10 = vld [vmem:[%s691_s1 + $0x4c] ss:$16 sps:$4 sm:$0xff]   ;;  %v505_v11 = vld [vmem:[%s691_s1 + $0x40] ss:$16 sps:$4 sm:$0xff]   ;;  %v506_v12 = vld [vmem:[%s691_s1 + $0x48] ss:$16 sps:$4 sm:$0xff]  }
   0x5   :  { %220 = vmatprep.subr.bf16.mxu0 %v495_v5  ;;  %263 = vmatprep.subr.bf16.mxu1 %v497_v6  ;;  %v507_v13 = vld [vmem:[%s691_s1 + $0x64] ss:$16 sps:$4 sm:$0xff]   ;;  %v509_v14 = vld [vmem:[%s691_s1 + $0x6c] ss:$16 sps:$4 sm:$0xff]   ;;  %v511_v15 = vld [vmem:[%s691_s1 + $0x60] ss:$16 sps:$4 sm:$0xff]  }
   0x6   :  { %v512_v16 = vld [vmem:[%s691_s1 + $0x68] ss:$16 sps:$4 sm:$0xff]   ;;  %v513_v17 = vld [vmem:[%s691_s1 + $0x84] ss:$16 sps:$4 sm:$0xff]   ;;  %v515_v18 = vld [vmem:[%s691_s1 + $0x8c] ss:$16 sps:$4 sm:$0xff]  }
   0x7   :  { %v517_v19 = vld [vmem:[%s691_s1 + $0x80] ss:$16 sps:$4 sm:$0xff]   ;;  %v518_v20 = vld [vmem:[%s691_s1 + $0x88] ss:$16 sps:$4 sm:$0xff]   ;;  %v519_v21 = vld [vmem:[%s691_s1 + $0xa4] ss:$16 sps:$4 sm:$0xff]  }
   0x8   :  { %221 = vmatpush1.bf16.msra.mxu0 %v499_v7  ;;  %264 = vmatpush1.bf16.msra.mxu1 %v500_v8  ;;  %v521_v22 = vld [vmem:[%s691_s1 + $0xac] ss:$16 sps:$4 sm:$0xff]   ;;  %v523_v23 = vld [vmem:[%s691_s1 + $0xa0] ss:$16 sps:$4 sm:$0xff]   ;;  %v524_v24 = vld [vmem:[%s691_s1 + $0xa8] ss:$16 sps:$4 sm:$0xff]  }
   0x9   :  { %222 = vmatprep.subr.bf16.mxu0 %v501_v9  ;;  %265 = vmatprep.subr.bf16.mxu1 %v503_v10  ;;  %v525_v25 = vld [vmem:[%s691_s1 + $0xc4] ss:$16 sps:$4 sm:$0xff]   ;;  %v527_v26 = vld [vmem:[%s691_s1 + $0xcc] ss:$16 sps:$4 sm:$0xff]   ;;  %v529_v27 = vld [vmem:[%s691_s1 + $0xc0] ss:$16 sps:$4 sm:$0xff]  }
   0xa   :  { %v530_v28 = vld [vmem:[%s691_s1 + $0xc8] ss:$16 sps:$4 sm:$0xff]   ;;  %v531_v29 = vld [vmem:[%s691_s1 + $0xe4] ss:$16 sps:$4 sm:$0xff]   ;;  %v533_v30 = vld [vmem:[%s691_s1 + $0xec] ss:$16 sps:$4 sm:$0xff]  }
   0xb   :  { %v535_v31 = vld [vmem:[%s691_s1 + $0xe0] ss:$16 sps:$4 sm:$0xff]   ;;  %v536_v32 = vld [vmem:[%s691_s1 + $0xe8] ss:$16 sps:$4 sm:$0xff]  }
   0xc   :  { %223 = vmatpush1.bf16.msra.mxu0 %v505_v11  ;;  %266 = vmatpush1.bf16.msra.mxu1 %v506_v12  ;;  %v537_v33 = vld [vmem:[%s692_s0] sm:$0xff]   ;;  %v358_v34 = vld [vmem:[%s693_s2 + $0x8] sm:$0xff] }
   0xd   :  { %224 = vmatprep.subr.bf16.mxu0 %v507_v13  ;;  %267 = vmatprep.subr.bf16.mxu1 %v509_v14  ;;  %v377_v35 = vld [vmem:[%s694_s3] sm:$0xff]  ;;  %v378_v13 = vld [vmem:[%s694_s3 + $0x8] sm:$0xff] }
   0xe   :  { %366 = vperm.xlu1 %488, %v358_v34   ;;  %v357_v50 = vld [vmem:[%s693_s2] sm:$0xff] }
  0x10   :  { %225 = vmatpush1.bf16.msra.mxu0 %v511_v15  ;;  %268 = vmatpush1.bf16.msra.mxu1 %v512_v16 }
  0x11   :  { %226 = vmatprep.subr.bf16.mxu0 %v513_v17  ;;  %269 = vmatprep.subr.bf16.mxu1 %v515_v18 }
  0x12   :  { %381 = vperm.xlu1 %488, %v377_v35  }
  0x14   :  { %227 = vmatpush1.bf16.msra.mxu0 %v517_v19  ;;  %270 = vmatpush1.bf16.msra.mxu1 %v518_v20 }
  0x15   :  { %228 = vmatprep.subr.bf16.mxu0 %v519_v21  ;;  %271 = vmatprep.subr.bf16.mxu1 %v521_v22 }
  0x18   :  { %229 = vmatpush1.bf16.msra.mxu0 %v523_v23  ;;  %272 = vmatpush1.bf16.msra.mxu1 %v524_v24 }
  0x19   :  { %230 = vmatprep.subr.bf16.mxu0 %v525_v25  ;;  %273 = vmatprep.subr.bf16.mxu1 %v527_v26 }
  0x1c   :  { %231 = vmatpush1.bf16.msra.mxu0 %v529_v27  ;;  %274 = vmatpush1.bf16.msra.mxu1 %v530_v28 }
  0x1d   :  { %232 = vmatprep.subr.bf16.mxu0 %v531_v29  ;;  %275 = vmatprep.subr.bf16.mxu1 %v533_v30 }
  0x20   :  { %233 = vmatpush1.bf16.msra.mxu0 %v535_v31  ;;  %276 = vmatpush1.bf16.msra.mxu1 %v536_v32 }
  0x23   :  { %251 = vmatmul.mubr.bf16.vlgmr.msra.gmra.mrb[0].mxu0 %v537_v33  ;;  %294 = vmatmul.mubr.bf16.vlgmr.msra.gmra.mrb[0].mxu1 %v537_v33 }
  0x8d   :  { %v367_v14 = vpop.permute.xlu1 %366 }
  0x91   :  { %v382_v15 = vpop.permute.xlu1 %381 }
  0xf6   :  { %v252_v36 = vpop.f32.mrb[0].mxu0  ;;  %v295_v37 = vpop.f32.mrb[0].mxu1 }
  0xf7   :  { %v254_v38 = vpop.f32.mrb[1].mxu0  ;;  %v297_v39 = vpop.f32.mrb[1].mxu1 }
  0xf8   :  { %v304_v40 = vadd.f32 %v254_v38, %v252_v36  ;;  %v256_v41 = vpop.f32.mrb[2].mxu0  ;;  %v299_v42 = vpop.f32.mrb[2].mxu1 }
  0xf9   :  { %v258_v43 = vpop.f32.mrb[3].mxu0  ;;  %v301_v44 = vpop.f32.mrb[3].mxu1 }
  0xfa   :  { %v309_v45 = vadd.f32 %v258_v43, %v256_v41  ;;  %v305_v46 = vadd.f32 %v304_v40, %v295_v37 }
  0xfc   :  { %v310_v47 = vadd.f32 %v309_v45, %v299_v42  ;;  %v306_v48 = vadd.f32 %v305_v46, %v297_v39 }
  0xfe   :  { %v311_v49 = vadd.f32 %v310_v47, %v301_v44  ;;  %307 = vadd.xlane.f32.xlu0 %v306_v48 }
 0x102   :  { %312 = vadd.xlane.f32.xlu0 %v311_v49 }
 0x118   :  { %361 = vperm.xlu0 %487, %v357_v50  }
 0x18b   :  { %v308_v51 = vpop.xlane.xlu0 %307 }
 0x18c   :  { %v315_v52 = vmul.f32 0.001953125, %v308_v51 }
 0x18e   :  { %v317_v53 = vsub.f32 %v252_v36, %v315_v52  ;;  %v318_v54 = vsub.f32 %v254_v38, %v315_v52  ;;  %v319_v55 = vsub.f32 %v295_v37, %v315_v52  ;;  %v320_v57 = vsub.f32 %v297_v39, %v315_v52 }
 0x18f   :  { %v313_v56 = vpop.xlane.xlu0 %312 }
 0x190   :  { %v316_v58 = vmul.f32 0.001953125, %v313_v56  ;;  %v325_v59 = vmul.f32 %v317_v53, %v317_v53  ;;  %v326_v60 = vmul.f32 %v318_v54, %v318_v54  ;;  %v327_v61 = vmul.f32 %v319_v55, %v319_v55 }
 0x191   :  { %v328_v2 = vmul.f32 %v320_v57, %v320_v57 }
 0x192   :  { %v321_v62 = vsub.f32 %v256_v41, %v316_v58  ;;  %v322_v63 = vsub.f32 %v258_v43, %v316_v58  ;;  %v333_v0 = vadd.f32 %v326_v60, %v325_v59  ;;  %v323_v1 = vsub.f32 %v299_v42, %v316_v58 }
 0x193   :  { %v324_v4 = vsub.f32 %v301_v44, %v316_v58 }
 0x194   :  { %v334_v3 = vadd.f32 %v333_v0, %v327_v61  ;;  %v329_v5 = vmul.f32 %v321_v62, %v321_v62  ;;  %v330_v6 = vmul.f32 %v322_v63, %v322_v63  ;;  %v331_v8 = vmul.f32 %v323_v1, %v323_v1 }
 0x195   :  { %v332_v10 = vmul.f32 %v324_v4, %v324_v4 }
 0x196   :  { %v335_v7 = vadd.f32 %v334_v3, %v328_v2  ;;  %v338_v9 = vadd.f32 %v330_v6, %v329_v5 }
 0x197   :  { %v362_v23 = vpop.permute.xlu0 %361 }
 0x198   :  { %336 = vadd.xlane.f32.xlu1 %v335_v7  ;;  %v339_v11 = vadd.f32 %v338_v9, %v331_v8 }
 0x19a   :  { %v340_v12 = vadd.f32 %v339_v11, %v332_v10 }
 0x19c   :  { %341 = vadd.xlane.f32.xlu1 %v340_v12 }
 0x1ad   :  { %386 = vperm.xlu1 %488, %v378_v13  }
 0x225   :  { %v337_v16 = vpop.xlane.xlu1 %336 }
 0x226   :  { %v343_v17 = vmul.f32 0.001953125, %v337_v16 }
 0x228   :  { %v345_v18 = vadd.f32 1e-05, %v343_v17 }
 0x229   :  { %v342_v19 = vpop.xlane.xlu1 %341 }
 0x22a   :  { %538 = vrsqrt.f32 %v345_v18  ;;  %v344_v20 = vmul.f32 0.001953125, %v342_v19 }
 0x22c   :  { %v346_v21 = vadd.f32 1e-05, %v344_v20 }
 0x22d   :  { %v387_v45 = vpop.permute.xlu1 %386 }
 0x22e   :  { %540 = vrsqrt.f32 %v346_v21 }
 0x234   :  { %v539_v22 = vpop.eup %538 }
 0x235   :  { %v349_v24 = vmul.f32 %v539_v22, %v317_v53  ;;  %v350_v25 = vmul.f32 %v539_v22, %v318_v54  ;;  %v351_v26 = vmul.f32 %v539_v22, %v319_v55  ;;  %v352_v27 = vmul.f32 %v539_v22, %v320_v57 }
 0x237   :  { %v369_v28 = vmul.f32 %v362_v23, %v349_v24  ;;  %v370_v29 = vmul.f32 %v362_v23, %v350_v25  ;;  %v371_v30 = vmul.f32 %v362_v23, %v351_v26  ;;  %v372_v31 = vmul.f32 %v362_v23, %v352_v27 }
 0x238   :  { %v541_v32 = vpop.eup %540 }
 0x239   :  { %v353_v33 = vmul.f32 %v541_v32, %v321_v62  ;;  %v354_v34 = vmul.f32 %v541_v32, %v322_v63  ;;  %v355_v35 = vmul.f32 %v541_v32, %v323_v1  ;;  %v356_v36 = vmul.f32 %v541_v32, %v324_v4 }
 0x23a   :  { %v389_v37 = vadd.f32 %v382_v15, %v369_v28  ;;  %v390_v38 = vadd.f32 %v382_v15, %v370_v29  ;;  %v391_v39 = vadd.f32 %v382_v15, %v371_v30  ;;  %v392_v40 = vadd.f32 %v382_v15, %v372_v31 }
 0x23b   :  { %v373_v41 = vmul.f32 %v367_v14, %v353_v33  ;;  %v374_v42 = vmul.f32 %v367_v14, %v354_v34  ;;  %v375_v43 = vmul.f32 %v367_v14, %v355_v35  ;;  %v376_v44 = vmul.f32 %v367_v14, %v356_v36 }
 0x23c   :  { %v397_v46 = vmul.f32 0.2, %v389_v37  ;;  %v398_v47 = vmul.f32 0.2, %v390_v38  ;;  %v399_v48 = vmul.f32 0.2, %v391_v39 }
 0x23d   :  { %v393_v49 = vadd.f32 %v387_v45, %v373_v41  ;;  %v394_v50 = vadd.f32 %v387_v45, %v374_v42  ;;  %v395_v51 = vadd.f32 %v387_v45, %v375_v43  ;;  %v396_v52 = vadd.f32 %v387_v45, %v376_v44 }
 0x23e   :  { %v400_v53 = vmul.f32 0.2, %v392_v40  ;;  %v405_v54 = vmax.f32 %v389_v37, %v397_v46  ;;  %v406_v55 = vmax.f32 %v390_v38, %v398_v47  ;;  %v407_v56 = vmax.f32 %v391_v39, %v399_v48 }
 0x23f   :  { %v401_v57 = vmul.f32 0.2, %v393_v49  ;;  %v402_v58 = vmul.f32 0.2, %v394_v50  ;;  %v403_v59 = vmul.f32 0.2, %v395_v51 }
 0x240   :  { %v404_v60 = vmul.f32 0.2, %v396_v52  ;;  %v408_v61 = vmax.f32 %v392_v40, %v400_v53  ;;  %v482_v62 = vpack.c.bf16 %v406_v55, %v405_v54 }
 0x241   :  { %v409_v63 = vmax.f32 %v393_v49, %v401_v57  ;;  %v410_v0 = vmax.f32 %v394_v50, %v402_v58  ;;  %v411_v1 = vmax.f32 %v395_v51, %v403_v59 }
 0x242   :  { %v412_v2 = vmax.f32 %v396_v52, %v404_v60  ;;  %v483_v3 = vpack.c.bf16 %v408_v61, %v407_v56  ;;  %437 = vst [vmem:[%s695_s4] sm:$0xff] %v482_v62 }
 0x243   :  { %v484_v4 = vpack.c.bf16 %v410_v0, %v409_v63 }
 0x244   :  { %v485_v5 = vpack.c.bf16 %v412_v2, %v411_v1  ;;  %438 = vst [vmem:[%s695_s4 + $0x8] sm:$0xff] %v483_v3 }
 0x245   :  { %439 = vst [vmem:[%s695_s4 + $0x10] sm:$0xff] %v484_v4 }
 0x246   :  { %440 = vst [vmem:[%s695_s4 + $0x18] sm:$0xff] %v485_v5 }

// kernel: discriminator_forward.6
= control target key start
LH: loop header
LB: loop body
LE: loop exit
PB: predicated region body
PF: predicated region fallthrough
CT: control target
= control target key end

     0   :  { %v468_v20 = vmov 0   ;;  %s584_s1 = inlined_call_operand.vmem [shape: bf16[256,128], index: 1, kind: input, shape index: {}]   ;;  %s585_s0 = inlined_call_operand.vmem [shape: bf16[32,256], index: 0, kind: input, shape index: {}]   ;;  %s586_s2 = inlined_call_operand.vmem [shape: f32[32,1], index: 2, kind: input, shape index: {}]   ;;  %s587_s3 = inlined_call_operand.vmem [shape: f32[32,1], index: 3, kind: input, shape index: {}]   ;;  %s588_s4 = inlined_call_operand.vmem [shape: bf16[32,128], index: 4, kind: output, shape index: {}]  }
   0x1   :  { %v438_v0 = vld [vmem:[%s584_s1 + $0x40] sm:$0xff]   ;;  %v440_v2 = vld [vmem:[%s584_s1 + $0x48] sm:$0xff]   ;;  %v442_v4 = vld [vmem:[%s584_s1 + $0x50] sm:$0xff]   ;;  %437 = vset.pattern.permute.xlu1 %v468_v20  ;;  %436 = vset.pattern.permute.xlu0 %v468_v20 }
   0x2   :  { %v439_v1 = vld [vmem:[%s584_s1] sm:$0xff]   ;;  %391 = vmatprep.subr.bf16.mxu0 %v438_v0  ;;  %419 = vmatprep.subr.bf16.mxu1 %v438_v0  ;;  %v441_v3 = vld [vmem:[%s584_s1 + $0x8] sm:$0xff]   ;;  %v443_v5 = vld [vmem:[%s584_s1 + $0x10] sm:$0xff]  }
   0x3   :  { %392 = vmatpush3.bf16.msra.mxu0 %v439_v1  ;;  %427 = vmatpush3.bf16.msra.mxu1 %v439_v1  ;;  %v444_v6 = vld [vmem:[%s584_s1 + $0x58] sm:$0xff]   ;;  %v446_v8 = vld [vmem:[%s584_s1 + $0x60] sm:$0xff]   ;;  %v448_v10 = vld [vmem:[%s584_s1 + $0x68] sm:$0xff]  }
   0x4   :  { %393 = vmatprep.subr.bf16.mxu0 %v440_v2  ;;  %420 = vmatprep.subr.bf16.mxu1 %v440_v2  ;;  %v445_v7 = vld [vmem:[%s584_s1 + $0x18] sm:$0xff]   ;;  %v447_v9 = vld [vmem:[%s584_s1 + $0x20] sm:$0xff]   ;;  %v449_v13 = vld [vmem:[%s584_s1 + $0x28] sm:$0xff]  }
   0x5   :  { %v456_v11 = vld [vmem:[%s585_s0 + $0x4] ss:$8 sps:$4 sm:$0xff]   ;;  %v459_v12 = vld [vmem:[%s585_s0 + $0x14] ss:$8 sps:$4 sm:$0xff]   ;;  %v454_v18 = vld [vmem:[%s585_s0] ss:$8 sps:$4 sm:$0xff]  }
   0x6   :  { %v450_v14 = vld [vmem:[%s584_s1 + $0x70] sm:$0xff]   ;;  %202 = vmatprep.mubr.bf16.mxu0 %v456_v11  ;;  %210 = vmatprep.mubr.bf16.mxu1 %v459_v12  ;;  %v452_v16 = vld [vmem:[%s584_s1 + $0x78] sm:$0xff]   ;;  %v265_v33 = vld [vmem:[%s586_s2 + $0x8] sm:$0xff] }
   0x7   :  { %394 = vmatpush3.bf16.msra.mxu0 %v441_v3  ;;  %428 = vmatpush3.bf16.msra.mxu1 %v441_v3  ;;  %v451_v15 = vld [vmem:[%s584_s1 + $0x30] sm:$0xff]   ;;  %v453_v17 = vld [vmem:[%s584_s1 + $0x38] sm:$0xff]   ;;  %v292_v36 = vld [vmem:[%s587_s3] sm:$0xff] }
   0x8   :  { %395 = vmatprep.subr.bf16.mxu0 %v442_v4  ;;  %421 = vmatprep.subr.bf16.mxu1 %v442_v4  ;;  %v457_v19 = vld [vmem:[%s585_s0 + $0x10] ss:$8 sps:$4 sm:$0xff]   ;;  %v293_v37 = vld [vmem:[%s587_s3 + $0x8] sm:$0xff]  ;;  %v264_v56 = vld [vmem:[%s586_s2] sm:$0xff] }
   0x9   :  { %v266_v34 = vld [vmem:[%s586_s2 + $0x10] sm:$0xff]  ;;  %v267_v35 = vld [vmem:[%s586_s2 + $0x18] sm:$0xff] }
   0xa   :  { %v294_v38 = vld [vmem:[%s587_s3 + $0x10] sm:$0xff]  ;;  %v295_v55 = vld [vmem:[%s587_s3 + $0x18] sm:$0xff] }
   0xb   :  { %396 = vmatpush3.bf16.msra.mxu0 %v443_v5  ;;  %429 = vmatpush3.bf16.msra.mxu1 %v443_v5 }
   0xc   :  { %397 = vmatprep.subr.bf16.mxu0 %v444_v6  ;;  %422 = vmatprep.subr.bf16.mxu1 %v444_v6 }
   0xf   :  { %398 = vmatpush3.bf16.msra.mxu0 %v445_v7  ;;  %430 = vmatpush3.bf16.msra.mxu1 %v445_v7 }
  0x10   :  { %399 = vmatprep.subr.bf16.mxu0 %v446_v8  ;;  %423 = vmatprep.subr.bf16.mxu1 %v446_v8 }
  0x13   :  { %400 = vmatpush3.bf16.msra.mxu0 %v447_v9  ;;  %431 = vmatpush3.bf16.msra.mxu1 %v447_v9 }
  0x14   :  { %401 = vmatprep.subr.bf16.mxu0 %v448_v10  ;;  %424 = vmatprep.subr.bf16.mxu1 %v448_v10 }
  0x17   :  { %402 = vmatpush3.bf16.msra.mxu0 %v449_v13  ;;  %432 = vmatpush3.bf16.msra.mxu1 %v449_v13 }
  0x18   :  { %403 = vmatprep.subr.bf16.mxu0 %v450_v14  ;;  %425 = vmatprep.subr.bf16.mxu1 %v450_v14 }
  0x1b   :  { %404 = vmatpush3.bf16.msra.mxu0 %v451_v15  ;;  %433 = vmatpush3.bf16.msra.mxu1 %v451_v15 }
  0x1c   :  { %405 = vmatprep.subr.bf16.mxu0 %v452_v16  ;;  %426 = vmatprep.subr.bf16.mxu1 %v452_v16 }
  0x1f   :  { %406 = vmatpush3.bf16.msra.mxu0 %v453_v17  ;;  %434 = vmatpush3.bf16.msra.mxu1 %v453_v17 }
  0x22   :  { %203 = vmatmul.mubr.bf16.vlgmr.msra.gmra.mrb[0].mxu0 %v454_v18  ;;  %211 = vmatmul.mubr.bf16.vlgmr.msra.gmra.mrb[0].mxu1 %v457_v19 }
  0xf5   :  { %v407_v21 = vpop.f32.mrb[0].mxu0  ;;  %v413_v22 = vpop.f32.mrb[0].mxu1 }
  0xf6   :  { %v408_v23 = vpop.f32.mrb[1].mxu0  ;;  %v414_v24 = vpop.f32.mrb[1].mxu1 }
  0xf7   :  { %v409_v25 = vadd.f32 %v408_v23, %v407_v21  ;;  %v415_v26 = vadd.f32 %v414_v24, %v413_v22  ;;  %v410_v27 = vpop.f32.mrb[2].mxu0  ;;  %v416_v28 = vpop.f32.mrb[2].mxu1 }
  0xf8   :  { %v411_v29 = vpop.f32.mrb[3].mxu0  ;;  %v417_v30 = vpop.f32.mrb[3].mxu1 }
  0xf9   :  { %v412_v31 = vadd.f32 %v411_v29, %v410_v27  ;;  %v418_v32 = vadd.f32 %v417_v30, %v416_v28  ;;  %223 = vadd.xlane.f32.xlu1 %v415_v26  ;;  %219 = vadd.xlane.f32.xlu0 %v409_v25 }
  0xfd   :  { %225 = vadd.xlane.f32.xlu1 %v418_v32  ;;  %221 = vadd.xlane.f32.xlu0 %v412_v31 }
 0x10e   :  { %275 = vperm.xlu1 %437, %v265_v33  }
 0x112   :  { %280 = vperm.xlu1 %437, %v266_v34  }
 0x116   :  { %285 = vperm.xlu1 %437, %v267_v35  }
 0x11a   :  { %298 = vperm.xlu1 %437, %v292_v36  }
 0x11e   :  { %303 = vperm.xlu1 %437, %v293_v37  }
 0x122   :  { %308 = vperm.xlu1 %437, %v294_v38  }
 0x186   :  { %v224_v39 = vpop.xlane.xlu1 %223  ;;  %v220_v40 = vpop.xlane.xlu0 %219 }
 0x187   :  { %v230_v41 = vmul.f32 0.0078125, %v224_v39  ;;  %v228_v42 = vmul.f32 0.0078125, %v220_v40 }
 0x189   :  { %v232_v43 = vsub.f32 %v409_v25, %v228_v42  ;;  %v234_v46 = vsub.f32 %v415_v26, %v230_v41 }
 0x18a   :  { %v226_v44 = vpop.xlane.xlu1 %225  ;;  %v222_v45 = vpop.xlane.xlu0 %221 }
 0x18b   :  { %v231_v47 = vmul.f32 0.0078125, %v226_v44  ;;  %v229_v48 = vmul.f32 0.0078125, %v222_v45  ;;  %v236_v49 = vmul.f32 %v232_v43, %v232_v43  ;;  %v238_v52 = vmul.f32 %v234_v46, %v234_v46 }
 0x18d   :  { %v233_v50 = vsub.f32 %v412_v31, %v229_v48  ;;  %240 = vadd.xlane.f32.xlu0 %v236_v49  ;;  %v235_v51 = vsub.f32 %v418_v32, %v231_v47 }
 0x18e   :  { %v276_v57 = vpop.permute.xlu1 %275 }
 0x18f   :  { %v237_v53 = vmul.f32 %v233_v50, %v233_v50  ;;  %v239_v54 = vmul.f32 %v235_v51, %v235_v51 }
 0x191   :  { %244 = vadd.xlane.f32.xlu0 %v238_v52  ;;  %242 = vadd.xlane.f32.xlu1 %v237_v53 }
 0x192   :  { %v281_v58 = vpop.permute.xlu1 %280 }
 0x195   :  { %246 = vadd.xlane.f32.xlu1 %v239_v54 }
 0x196   :  { %v286_v59 = vpop.permute.xlu1 %285 }
 0x19a   :  { %v299_v60 = vpop.permute.xlu1 %298 }
 0x19e   :  { %v304_v61 = vpop.permute.xlu1 %303 }
 0x1a2   :  { %v309_v62 = vpop.permute.xlu1 %308 }
 0x1a6   :  { %313 = vperm.xlu1 %437, %v295_v55  }
 0x1a7   :  { %270 = vperm.xlu0 %436, %v264_v56  }
 0x21a   :  { %v241_v63 = vpop.xlane.xlu0 %240 }
 0x21b   :  { %v248_v0 = vmul.f32 0.0078125, %v241_v63 }
 0x21d   :  { %v252_v1 = vadd.f32 1e-05, %v248_v0 }
 0x21e   :  { %v243_v2 = vpop.xlane.xlu1 %242  ;;  %v245_v3 = vpop.xlane.xlu0 %244 }
 0x21f   :  { %460 = vrsqrt.f32 %v252_v1  ;;  %v249_v4 = vmul.f32 0.0078125, %v243_v2  ;;  %v250_v5 = vmul.f32 0.0078125, %v245_v3 }
 0x221   :  { %v253_v6 = vadd.f32 1e-05, %v249_v4  ;;  %v254_v7 = vadd.f32 1e-05, %v250_v5 }
 0x222   :  { %v247_v8 = vpop.xlane.xlu1 %246 }
 0x223   :  { %462 = vrsqrt.f32 %v253_v6  ;;  %v251_v9 = vmul.f32 0.0078125, %v247_v8 }
 0x224   :  { %464 = vrsqrt.f32 %v254_v7 }
 0x225   :  { %v255_v10 = vadd.f32 1e-05, %v251_v9 }
 0x226   :  { %v271_v12 = vpop.permute.xlu0 %270  ;;  %v314_v29 = vpop.permute.xlu1 %313 }
 0x227   :  { %466 = vrsqrt.f32 %v255_v10 }
 0x229   :  { %v461_v11 = vpop.eup %460 }
 0x22a   :  { %v260_v13 = vmul.f32 %v461_v11, %v232_v43 }
 0x22c   :  { %v288_v14 = vmul.f32 %v271_v12, %v260_v13 }
 0x22d   :  { %v463_v15 = vpop.eup %462 }
 0x22e   :  { %v465_v16 = vpop.eup %464  ;;  %v261_v17 = vmul.f32 %v463_v15, %v233_v50  ;;  %v316_v18 = vadd.f32 %v299_v60, %v288_v14 }
 0x22f   :  { %v262_v19 = vmul.f32 %v465_v16, %v234_v46 }
 0x230   :  { %v289_v20 = vmul.f32 %v276_v57, %v261_v17  ;;  %v320_v25 = vmul.f32 0.2, %v316_v18 }
 0x231   :  { %v467_v21 = vpop.eup %466  ;;  %v290_v22 = vmul.f32 %v281_v58, %v262_v19 }
 0x232   :  { %v263_v23 = vmul.f32 %v467_v21, %v235_v51  ;;  %v317_v24 = vadd.f32 %v304_v61, %v289_v20  ;;  %v324_v33 = vmax.f32 %v316_v18, %v320_v25 }
 0x233   :  { %v318_v26 = vadd.f32 %v309_v62, %v290_v22 }
 0x234   :  { %v291_v27 = vmul.f32 %v286_v59, %v263_v23  ;;  %v321_v28 = vmul.f32 0.2, %v317_v24 }
 0x235   :  { %v322_v31 = vmul.f32 0.2, %v318_v26 }
 0x236   :  { %v319_v30 = vadd.f32 %v314_v29, %v291_v27  ;;  %v325_v32 = vmax.f32 %v317_v24, %v321_v28 }
 0x237   :  { %v326_v36 = vmax.f32 %v318_v26, %v322_v31 }
 0x238   :  { %v323_v34 = vmul.f32 0.2, %v319_v30  ;;  %v383_v35 = vpack.c.bf16 %v325_v32, %v324_v33 }
 0x23a   :  { %v327_v37 = vmax.f32 %v319_v30, %v323_v34  ;;  %384 = vst [vmem:[%s588_s4] sm:$0xff] %v383_v35  }
 0x23c   :  { %v388_v38 = vpack.c.bf16 %v327_v37, %v326_v36 }
 0x23e   :  { %390 = vst [vmem:[%s588_s4 + $0x8] sm:$0xff] %v388_v38  }

// kernel: discriminator_forward.7
= control target key start
LH: loop header
LB: loop body
LE: loop exit
PB: predicated region body
PF: predicated region fallthrough
CT: control target
= control target key end

     0   :  { %s4390_s0 = inlined_call_operand.vmem [shape: bf16[64,512], index: 0, kind: input, shape index: {}]   ;;  %s4391_s1 = inlined_call_operand.vmem [shape: bf16[4,512,8], index: 1, kind: input, shape index: {}]   ;;  %s4392_s2 = inlined_call_operand.vmem [shape: f32[64,4], index: 2, kind: input, shape index: {}]   ;;  %s4393_s3 = inlined_call_operand.vmem [shape: f32[8,4], index: 3, kind: input, shape index: {}]   ;;  %s4394_s4 = inlined_call_operand.vmem [shape: f32[4,8], index: 4, kind: input, shape index: {}]   ;;  %s4395_s5 = inlined_call_operand.vmem [shape: f32[8,2], index: 5, kind: input, shape index: {}]   ;;  %s4396_s6 = inlined_call_operand.<no memory space> [shape: f32[1,1], index: 6, kind: input, shape index: {}]   ;;  %s4397_s7 = inlined_call_operand.hbm [shape: f32[1,2], index: 7, kind: output, shape index: {}]  }
   0x1   :  { %v12_v0 = vstv %s4396_s6 }
   0x2   :  { %13 = vst [vmem:[#allocation2] sm:$0x1] %v12_v0 }
   0x3   :  { %v3360_v1 = vld [vmem:[%s4391_s1 + $0x40] sm:$0xff]   ;;  %v3364_v5 = vld [vmem:[%s4391_s1 + $0x48] sm:$0xff]   ;;  %v3368_v9 = vld [vmem:[%s4391_s1 + $0x50] sm:$0xff]  }
   0x4   :  { %v3361_v2 = vld [vmem:[%s4391_s1 + $0xc0] sm:$0xff]   ;;  %2918 = vmatprep.subr.bf16.mxu0 %v3360_v1  ;;  %v3365_v6 = vld [vmem:[%s4391_s1 + $0xc8] sm:$0xff]   ;;  %v3369_v10 = vld [vmem:[%s4391_s1 + $0xd0] sm:$0xff]  }
   0x5   :  { %v3362_v3 = vld [vmem:[%s4391_s1] sm:$0xff]   ;;  %2958 = vmatprep.subr.bf16.mxu1 %v3361_v2  ;;  %v3366_v7 = vld [vmem:[%s4391_s1 + $0x8] sm:$0xff]   ;;  %v3370_v11 = vld [vmem:[%s4391_s1 + $0x10] sm:$0xff]  }
   0x6   :  { %v3363_v4 = vld [vmem:[%s4391_s1 + $0x80] sm:$0xff]   ;;  %2919 = vmatpush3.bf16.msra.mxu0 %v3362_v3  ;;  %v3367_v8 = vld [vmem:[%s4391_s1 + $0x88] sm:$0xff]   ;;  %v3371_v12 = vld [vmem:[%s4391_s1 + $0x90] sm:$0xff]  }
   0x7   :  { %2959 = vmatpush3.bf16.msra.mxu1 %v3363_v4  ;;  %2920 = vmatprep.subr.bf16.mxu0 %v3364_v5  ;;  %v3372_v13 = vld [vmem:[%s4391_s1 + $0x58] sm:$0xff]   ;;  %v3376_v17 = vld [vmem:[%s4391_s1 + $0x60] sm:$0xff]   ;;  %v3380_v21 = vld [vmem:[%s4391_s1 + $0x68] sm:$0xff]  }
   0x8   :  { %2960 = vmatprep.subr.bf16.mxu1 %v3365_v6  ;;  %v3373_v14 = vld [vmem:[%s4391_s1 + $0xd8] sm:$0xff]   ;;  %v3377_v18 = vld [vmem:[%s4391_s1 + $0xe0] sm:$0xff]   ;;  %v3381_v22 = vld [vmem:[%s4391_s1 + $0xe8] sm:$0xff]  }
   0x9   :  { %v3374_v15 = vld [vmem:[%s4391_s1 + $0x18] sm:$0xff]   ;;  %v3378_v19 = vld [vmem:[%s4391_s1 + $0x20] sm:$0xff]   ;;  %v3382_v23 = vld [vmem:[%s4391_s1 + $0x28] sm:$0xff]  }
   0xa   :  { %2921 = vmatpush3.bf16.msra.mxu0 %v3366_v7  ;;  %v3375_v16 = vld [vmem:[%s4391_s1 + $0x98] sm:$0xff]   ;;  %v3379_v20 = vld [vmem:[%s4391_s1 + $0xa0] sm:$0xff]   ;;  %v3383_v24 = vld [vmem:[%s4391_s1 + $0xa8] sm:$0xff]  }
   0xb   :  { %2961 = vmatpush3.bf16.msra.mxu1 %v3367_v8  ;;  %2922 = vmatprep.subr.bf16.mxu0 %v3368_v9  ;;  %v3384_v25 = vld [vmem:[%s4391_s1 + $0x70] sm:$0xff]   ;;  %v3388_v29 = vld [vmem:[%s4391_s1 + $0x78] sm:$0xff]   ;;  %v3398_v37 = vld [vmem:[%s4391_s1 + $0x140] sm:$0xff]  }
   0xc   :  { %2962 = vmatprep.subr.bf16.mxu1 %v3369_v10  ;;  %v3385_v26 = vld [vmem:[%s4391_s1 + $0xf0] sm:$0xff]   ;;  %v3389_v30 = vld [vmem:[%s4391_s1 + $0xf8] sm:$0xff]   ;;  %v3399_v38 = vld [vmem:[%s4391_s1 + $0x1c0] sm:$0xff]  }
   0xd   :  { %v3386_v27 = vld [vmem:[%s4391_s1 + $0x30] sm:$0xff]   ;;  %v3390_v31 = vld [vmem:[%s4391_s1 + $0x38] sm:$0xff]   ;;  %v3400_v39 = vld [vmem:[%s4391_s1 + $0x100] sm:$0xff]  }
   0xe   :  { %2923 = vmatpush3.bf16.msra.mxu0 %v3370_v11  ;;  %v3387_v28 = vld [vmem:[%s4391_s1 + $0xb0] sm:$0xff]   ;;  %v3391_v32 = vld [vmem:[%s4391_s1 + $0xb8] sm:$0xff]   ;;  %v3401_v40 = vld [vmem:[%s4391_s1 + $0x180] sm:$0xff]  }
   0xf   :  { %2963 = vmatpush3.bf16.msra.mxu1 %v3371_v12  ;;  %2924 = vmatprep.subr.bf16.mxu0 %v3372_v13  ;;  %v3700_v33 = vld [vmem:[%s4390_s0 + $0x4] ss:$16 sps:$4 sm:$0xff]   ;;  %v3705_v34 = vld [vmem:[%s4390_s0 + $0xc] ss:$16 sps:$4 sm:$0xff]   ;;  %v3711_v35 = vld [vmem:[%s4390_s0] ss:$16 sps:$4 sm:$0xff]  }
  0x10   :  { %2964 = vmatprep.subr.bf16.mxu1 %v3373_v14  ;;  %414 = vmatprep.mubr.bf16.mxu0 %v3700_v33  ;;  %v3716_v36 = vld [vmem:[%s4390_s0 + $0x8] ss:$16 sps:$4 sm:$0xff]   ;;  %v3748_v45 = vld [vmem:[%s4390_s0 + $0x24] ss:$16 sps:$4 sm:$0xff]   ;;  %v3753_v46 = vld [vmem:[%s4390_s0 + $0x2c] ss:$16 sps:$4 sm:$0xff]  }
  0x11   :  { %479 = vmatprep.mubr.bf16.mxu1 %v3705_v34  ;;  %v3402_v41 = vld [vmem:[%s4391_s1 + $0x148] sm:$0xff]   ;;  %v3758_v47 = vld [vmem:[%s4390_s0 + $0x20] ss:$16 sps:$4 sm:$0xff]   ;;  %v3416_v53 = vld [vmem:[%s4391_s1 + $0x158] sm:$0xff]  }
  0x12   :  { %2925 = vmatpush3.bf16.msra.mxu0 %v3374_v15  ;;  %v3403_v42 = vld [vmem:[%s4391_s1 + $0x1c8] sm:$0xff]   ;;  %v3412_v49 = vld [vmem:[%s4391_s1 + $0x150] sm:$0xff]   ;;  %v3417_v54 = vld [vmem:[%s4391_s1 + $0x1d8] sm:$0xff]  }
  0x13   :  { %2965 = vmatpush3.bf16.msra.mxu1 %v3375_v16  ;;  %2926 = vmatprep.subr.bf16.mxu0 %v3376_v17  ;;  %v3404_v43 = vld [vmem:[%s4391_s1 + $0x108] sm:$0xff]   ;;  %v3413_v50 = vld [vmem:[%s4391_s1 + $0x1d0] sm:$0xff]   ;;  %v3418_v55 = vld [vmem:[%s4391_s1 + $0x118] sm:$0xff]  }
  0x14   :  { %2966 = vmatprep.subr.bf16.mxu1 %v3377_v18  ;;  %v3405_v44 = vld [vmem:[%s4391_s1 + $0x188] sm:$0xff]   ;;  %v3414_v51 = vld [vmem:[%s4391_s1 + $0x110] sm:$0xff]   ;;  %v3419_v56 = vld [vmem:[%s4391_s1 + $0x198] sm:$0xff]  }
  0x15   :  { %v3764_v48 = vld [vmem:[%s4390_s0 + $0x28] ss:$16 sps:$4 sm:$0xff]   ;;  %v3415_v52 = vld [vmem:[%s4391_s1 + $0x190] sm:$0xff]   ;;  %v3801_v58 = vld [vmem:[%s4390_s0 + $0x4c] ss:$16 sps:$4 sm:$0xff]  }
  0x16   :  { %2927 = vmatpush3.bf16.msra.mxu0 %v3378_v19  ;;  %v3796_v57 = vld [vmem:[%s4390_s0 + $0x44] ss:$16 sps:$4 sm:$0xff]   ;;  %v3806_v59 = vld [vmem:[%s4390_s0 + $0x40] ss:$16 sps:$4 sm:$0xff]   ;;  %v3811_v60 = vld [vmem:[%s4390_s0 + $0x48] ss:$16 sps:$4 sm:$0xff]  }
  0x17   :  { %2967 = vmatpush3.bf16.msra.mxu1 %v3379_v20  ;;  %2928 = vmatprep.subr.bf16.mxu0 %v3380_v21  ;;  %v3426_v61 = vld [vmem:[%s4391_s1 + $0x160] sm:$0xff]   ;;  %v3430_v1 = vld [vmem:[%s4391_s1 + $0x168] sm:$0xff]   ;;  %v3440_v9 = vld [vmem:[%s4391_s1 + $0x170] sm:$0xff]  }
  0x18   :  { %2968 = vmatprep.subr.bf16.mxu1 %v3381_v22  ;;  %v3427_v62 = vld [vmem:[%s4391_s1 + $0x1e0] sm:$0xff]   ;;  %v3431_v2 = vld [vmem:[%s4391_s1 + $0x1e8] sm:$0xff]   ;;  %v3441_v10 = vld [vmem:[%s4391_s1 + $0x1f0] sm:$0xff]  }
  0x19   :  { %v3428_v63 = vld [vmem:[%s4391_s1 + $0x120] sm:$0xff]   ;;  %v3432_v3 = vld [vmem:[%s4391_s1 + $0x128] sm:$0xff]   ;;  %v3442_v11 = vld [vmem:[%s4391_s1 + $0x130] sm:$0xff]  }
  0x1a   :  { %2929 = vmatpush3.bf16.msra.mxu0 %v3382_v23  ;;  %v3429_v0 = vld [vmem:[%s4391_s1 + $0x1a0] sm:$0xff]   ;;  %v3433_v4 = vld [vmem:[%s4391_s1 + $0x1a8] sm:$0xff]   ;;  %v3443_v12 = vld [vmem:[%s4391_s1 + $0x1b0] sm:$0xff]  }
  0x1b   :  { %2969 = vmatpush3.bf16.msra.mxu1 %v3383_v24  ;;  %2930 = vmatprep.subr.bf16.mxu0 %v3384_v25  ;;  %v3844_v5 = vld [vmem:[%s4390_s0 + $0x64] ss:$16 sps:$4 sm:$0xff]   ;;  %v3849_v6 = vld [vmem:[%s4390_s0 + $0x6c] ss:$16 sps:$4 sm:$0xff]   ;;  %v3855_v7 = vld [vmem:[%s4390_s0 + $0x60] ss:$16 sps:$4 sm:$0xff]  }
  0x1c   :  { %2970 = vmatprep.subr.bf16.mxu1 %v3385_v26  ;;  %v3860_v8 = vld [vmem:[%s4390_s0 + $0x68] ss:$16 sps:$4 sm:$0xff]   ;;  %v3448_v17 = vld [vmem:[%s4391_s1 + $0x240] sm:$0xff]   ;;  %v3456_v25 = vld [vmem:[%s4391_s1 + $0x250] sm:$0xff]  }
  0x1d   :  { %v3444_v13 = vld [vmem:[%s4391_s1 + $0x178] sm:$0xff]   ;;  %v3449_v18 = vld [vmem:[%s4391_s1 + $0x2c0] sm:$0xff]   ;;  %v3452_v21 = vld [vmem:[%s4391_s1 + $0x248] sm:$0xff]  }
  0x1e   :  { %2931 = vmatpush3.bf16.msra.mxu0 %v3386_v27  ;;  %v3445_v14 = vld [vmem:[%s4391_s1 + $0x1f8] sm:$0xff]   ;;  %v3450_v19 = vld [vmem:[%s4391_s1 + $0x200] sm:$0xff]   ;;  %v3453_v22 = vld [vmem:[%s4391_s1 + $0x2c8] sm:$0xff]  }
  0x1f   :  { %2971 = vmatpush3.bf16.msra.mxu1 %v3387_v28  ;;  %2932 = vmatprep.subr.bf16.mxu0 %v3388_v29  ;;  %v3446_v15 = vld [vmem:[%s4391_s1 + $0x138] sm:$0xff]   ;;  %v3451_v20 = vld [vmem:[%s4391_s1 + $0x280] sm:$0xff]   ;;  %v3454_v23 = vld [vmem:[%s4391_s1 + $0x208] sm:$0xff]  }
  0x20   :  { %2972 = vmatprep.subr.bf16.mxu1 %v3389_v30  ;;  %v3447_v16 = vld [vmem:[%s4391_s1 + $0x1b8] sm:$0xff]   ;;  %v3455_v24 = vld [vmem:[%s4391_s1 + $0x288] sm:$0xff]   ;;  %v3457_v26 = vld [vmem:[%s4391_s1 + $0x2d0] sm:$0xff]  }
  0x21   :  { %v3458_v27 = vld [vmem:[%s4391_s1 + $0x210] sm:$0xff]   ;;  %v3460_v29 = vld [vmem:[%s4391_s1 + $0x258] sm:$0xff]  }
  0x22   :  { %2933 = vmatpush3.bf16.msra.mxu0 %v3390_v31  ;;  %v3459_v28 = vld [vmem:[%s4391_s1 + $0x290] sm:$0xff]   ;;  %v3461_v30 = vld [vmem:[%s4391_s1 + $0x2d8] sm:$0xff]  }
  0x23   :  { %2973 = vmatpush3.bf16.msra.mxu1 %v3391_v32  ;;  %2998 = vmatprep.subr.bf16.mxu0 %v3398_v37  ;;  %v3462_v31 = vld [vmem:[%s4391_s1 + $0x218] sm:$0xff]   ;;  %v3464_v37 = vld [vmem:[%s4391_s1 + $0x260] sm:$0xff]  }
  0x24   :  { %3038 = vmatprep.subr.bf16.mxu1 %v3399_v38  ;;  %v3463_v32 = vld [vmem:[%s4391_s1 + $0x298] sm:$0xff]   ;;  %v3465_v38 = vld [vmem:[%s4391_s1 + $0x2e0] sm:$0xff]  }
  0x25   :  { %415 = vmatmul.mubr.bf16.vlgmr.msra.gmra.mrb[0].mxu0 %v3711_v35 }
  0x26   :  { %480 = vmatmul.mubr.bf16.vlgmr.msra.gmra.mrb[0].mxu1 %v3716_v36  ;;  %2999 = vmatpush3.bf16.msra.mxu0 %v3400_v39  ;;  %v3466_v39 = vld [vmem:[%s4391_s1 + $0x220] sm:$0xff]  }
  0x27   :  { %3039 = vmatpush3.bf16.msra.mxu1 %v3401_v40  ;;  %3000 = vmatprep.subr.bf16.mxu0 %v3402_v41  ;;  %v3467_v40 = vld [vmem:[%s4391_s1 + $0x2a0] sm:$0xff]   ;;  %v3468_v41 = vld [vmem:[%s4391_s1 + $0x268] sm:$0xff]  }
  0x28   :  { %3040 = vmatprep.subr.bf16.mxu1 %v3403_v42  ;;  %422 = vmatprep.mubr.bf16.mxu0 %v3748_v45  ;;  %v3469_v42 = vld [vmem:[%s4391_s1 + $0x2e8] sm:$0xff]  }
  0x29   :  { %487 = vmatprep.mubr.bf16.mxu1 %v3753_v46 }
  0x2a   :  { %3001 = vmatpush3.bf16.msra.mxu0 %v3404_v43  ;;  %v3470_v43 = vld [vmem:[%s4391_s1 + $0x228] sm:$0xff]  }
  0x2b   :  { %3041 = vmatpush3.bf16.msra.mxu1 %v3405_v44  ;;  %3002 = vmatprep.subr.bf16.mxu0 %v3412_v49  ;;  %v3471_v44 = vld [vmem:[%s4391_s1 + $0x2a8] sm:$0xff]   ;;  %v3472_v49 = vld [vmem:[%s4391_s1 + $0x270] sm:$0xff]  }
  0x2c   :  { %3042 = vmatprep.subr.bf16.mxu1 %v3413_v50  ;;  %v3473_v50 = vld [vmem:[%s4391_s1 + $0x2f0] sm:$0xff]  }
  0x2d   :  { %423 = vmatmul.mubr.bf16.gmra.mrb[4].mxu0 %v3758_v47 }
  0x2e   :  { %488 = vmatmul.mubr.bf16.gmra.mrb[4].mxu1 %v3764_v48  ;;  %3003 = vmatpush3.bf16.msra.mxu0 %v3414_v51  ;;  %v3474_v51 = vld [vmem:[%s4391_s1 + $0x230] sm:$0xff]  }
  0x2f   :  { %3043 = vmatpush3.bf16.msra.mxu1 %v3415_v52  ;;  %3004 = vmatprep.subr.bf16.mxu0 %v3416_v53  ;;  %v3475_v52 = vld [vmem:[%s4391_s1 + $0x2b0] sm:$0xff]   ;;  %v3476_v53 = vld [vmem:[%s4391_s1 + $0x278] sm:$0xff]  }
  0x30   :  { %3044 = vmatprep.subr.bf16.mxu1 %v3417_v54  ;;  %430 = vmatprep.mubr.bf16.mxu0 %v3796_v57  ;;  %v3477_v54 = vld [vmem:[%s4391_s1 + $0x2f8] sm:$0xff]  }
  0x31   :  { %495 = vmatprep.mubr.bf16.mxu1 %v3801_v58 }
  0x32   :  { %3005 = vmatpush3.bf16.msra.mxu0 %v3418_v55  ;;  %v3478_v55 = vld [vmem:[%s4391_s1 + $0x238] sm:$0xff]  }
  0x33   :  { %3045 = vmatpush3.bf16.msra.mxu1 %v3419_v56  ;;  %3006 = vmatprep.subr.bf16.mxu0 %v3426_v61  ;;  %v3479_v56 = vld [vmem:[%s4391_s1 + $0x2b8] sm:$0xff]   ;;  %v3480_v61 = vld [vmem:[%s4391_s1 + $0x340] sm:$0xff]  }
  0x34   :  { %3046 = vmatprep.subr.bf16.mxu1 %v3427_v62  ;;  %v3481_v62 = vld [vmem:[%s4391_s1 + $0x3c0] sm:$0xff]  }
  0x35   :  { %431 = vmatmul.mubr.bf16.gmra.mrb[8].mxu0 %v3806_v59 }
  0x36   :  { %496 = vmatmul.mubr.bf16.gmra.mrb[8].mxu1 %v3811_v60  ;;  %3007 = vmatpush3.bf16.msra.mxu0 %v3428_v63  ;;  %v3482_v63 = vld [vmem:[%s4391_s1 + $0x300] sm:$0xff]  }
  0x37   :  { %3047 = vmatpush3.bf16.msra.mxu1 %v3429_v0  ;;  %3008 = vmatprep.subr.bf16.mxu0 %v3430_v1  ;;  %v3483_v0 = vld [vmem:[%s4391_s1 + $0x380] sm:$0xff]   ;;  %v3484_v1 = vld [vmem:[%s4391_s1 + $0x348] sm:$0xff]  }
  0x38   :  { %3048 = vmatprep.subr.bf16.mxu1 %v3431_v2  ;;  %438 = vmatprep.mubr.bf16.mxu0 %v3844_v5  ;;  %v3485_v2 = vld [vmem:[%s4391_s1 + $0x3c8] sm:$0xff]  }
  0x39   :  { %503 = vmatprep.mubr.bf16.mxu1 %v3849_v6 }
  0x3a   :  { %3009 = vmatpush3.bf16.msra.mxu0 %v3432_v3  ;;  %v3486_v3 = vld [vmem:[%s4391_s1 + $0x308] sm:$0xff]  }
  0x3b   :  { %3049 = vmatpush3.bf16.msra.mxu1 %v3433_v4  ;;  %3010 = vmatprep.subr.bf16.mxu0 %v3440_v9  ;;  %v3487_v4 = vld [vmem:[%s4391_s1 + $0x388] sm:$0xff]   ;;  %v3488_v9 = vld [vmem:[%s4391_s1 + $0x350] sm:$0xff]  }
  0x3c   :  { %3050 = vmatprep.subr.bf16.mxu1 %v3441_v10  ;;  %v3489_v10 = vld [vmem:[%s4391_s1 + $0x3d0] sm:$0xff]  }
  0x3d   :  { %439 = vmatmul.mubr.bf16.gmra.mrb[12].mxu0 %v3855_v7 }
  0x3e   :  { %504 = vmatmul.mubr.bf16.gmra.mrb[12].mxu1 %v3860_v8  ;;  %801 = vmatprep.mubr.bf16.mxu0 %v3700_v33 }
  0x3f   :  { %866 = vmatprep.mubr.bf16.mxu1 %v3705_v34  ;;  %3011 = vmatpush3.bf16.msra.mxu0 %v3442_v11  ;;  %v3490_v11 = vld [vmem:[%s4391_s1 + $0x310] sm:$0xff]  }
  0x40   :  { %3051 = vmatpush3.bf16.msra.mxu1 %v3443_v12  ;;  %3012 = vmatprep.subr.bf16.mxu0 %v3444_v13  ;;  %v3491_v12 = vld [vmem:[%s4391_s1 + $0x390] sm:$0xff]   ;;  %v3492_v13 = vld [vmem:[%s4391_s1 + $0x358] sm:$0xff]  }
  0x41   :  { %3052 = vmatprep.subr.bf16.mxu1 %v3445_v14  ;;  %v3493_v14 = vld [vmem:[%s4391_s1 + $0x3d8] sm:$0xff]  }
  0x43   :  { %3013 = vmatpush3.bf16.msra.mxu0 %v3446_v15  ;;  %v3494_v15 = vld [vmem:[%s4391_s1 + $0x318] sm:$0xff]  }
  0x44   :  { %3053 = vmatpush3.bf16.msra.mxu1 %v3447_v16  ;;  %3078 = vmatprep.subr.bf16.mxu0 %v3448_v17  ;;  %v3495_v16 = vld [vmem:[%s4391_s1 + $0x398] sm:$0xff]   ;;  %v3496_v17 = vld [vmem:[%s4391_s1 + $0x360] sm:$0xff]  }
  0x45   :  { %3118 = vmatprep.subr.bf16.mxu1 %v3449_v18  ;;  %v3497_v18 = vld [vmem:[%s4391_s1 + $0x3e0] sm:$0xff]  }
  0x46   :  { %802 = vmatmul.mubr.bf16.vlgmr.msra.gmra.mrb[16].mxu0 %v3711_v35 }
  0x47   :  { %867 = vmatmul.mubr.bf16.vlgmr.msra.gmra.mrb[16].mxu1 %v3716_v36  ;;  %3079 = vmatpush3.bf16.msra.mxu0 %v3450_v19  ;;  %v3498_v19 = vld [vmem:[%s4391_s1 + $0x320] sm:$0xff]  }
  0x48   :  { %3119 = vmatpush3.bf16.msra.mxu1 %v3451_v20  ;;  %809 = vmatprep.mubr.bf16.mxu0 %v3748_v45  ;;  %v3499_v20 = vld [vmem:[%s4391_s1 + $0x3a0] sm:$0xff]  }
  0x49   :  { %3080 = vmatprep.subr.bf16.mxu0 %v3452_v21  ;;  %874 = vmatprep.mubr.bf16.mxu1 %v3753_v46  ;;  %v3500_v21 = vld [vmem:[%s4391_s1 + $0x368] sm:$0xff]  }
  0x4a   :  { %3120 = vmatprep.subr.bf16.mxu1 %v3453_v22  ;;  %v3501_v22 = vld [vmem:[%s4391_s1 + $0x3e8] sm:$0xff]  }
  0x4b   :  { %3081 = vmatpush3.bf16.msra.mxu0 %v3454_v23  ;;  %v3502_v23 = vld [vmem:[%s4391_s1 + $0x328] sm:$0xff]  }
  0x4c   :  { %3121 = vmatpush3.bf16.msra.mxu1 %v3455_v24  ;;  %3082 = vmatprep.subr.bf16.mxu0 %v3456_v25  ;;  %v3503_v24 = vld [vmem:[%s4391_s1 + $0x3a8] sm:$0xff]   ;;  %v3504_v25 = vld [vmem:[%s4391_s1 + $0x370] sm:$0xff]  }
  0x4d   :  { %3122 = vmatprep.subr.bf16.mxu1 %v3457_v26  ;;  %v3505_v26 = vld [vmem:[%s4391_s1 + $0x3f0] sm:$0xff]  }
  0x4e   :  { %810 = vmatmul.mubr.bf16.gmra.mrb[20].mxu0 %v3758_v47 }
  0x4f   :  { %875 = vmatmul.mubr.bf16.gmra.mrb[20].mxu1 %v3764_v48  ;;  %3083 = vmatpush3.bf16.msra.mxu0 %v3458_v27  ;;  %v3506_v27 = vld [vmem:[%s4391_s1 + $0x330] sm:$0xff]  }
  0x50   :  { %3123 = vmatpush3.bf16.msra.mxu1 %v3459_v28  ;;  %817 = vmatprep.mubr.bf16.mxu0 %v3796_v57  ;;  %v3507_v28 = vld [vmem:[%s4391_s1 + $0x3b0] sm:$0xff]  }
  0x51   :  { %3084 = vmatprep.subr.bf16.mxu0 %v3460_v29  ;;  %882 = vmatprep.mubr.bf16.mxu1 %v3801_v58  ;;  %v3508_v29 = vld [vmem:[%s4391_s1 + $0x378] sm:$0xff]  }
  0x52   :  { %3124 = vmatprep.subr.bf16.mxu1 %v3461_v30  ;;  %v3509_v30 = vld [vmem:[%s4391_s1 + $0x3f8] sm:$0xff]  }
  0x53   :  { %3085 = vmatpush3.bf16.msra.mxu0 %v3462_v31  ;;  %v3510_v31 = vld [vmem:[%s4391_s1 + $0x338] sm:$0xff]  }
  0x54   :  { %3125 = vmatpush3.bf16.msra.mxu1 %v3463_v32  ;;  %3086 = vmatprep.subr.bf16.mxu0 %v3464_v37  ;;  %v3511_v32 = vld [vmem:[%s4391_s1 + $0x3b8] sm:$0xff]  }
  0x55   :  { %3126 = vmatprep.subr.bf16.mxu1 %v3465_v38 }
  0x56   :  { %818 = vmatmul.mubr.bf16.gmra.mrb[24].mxu0 %v3806_v59 }
  0x57   :  { %883 = vmatmul.mubr.bf16.gmra.mrb[24].mxu1 %v3811_v60  ;;  %3087 = vmatpush3.bf16.msra.mxu0 %v3466_v39 }
  0x58   :  { %3127 = vmatpush3.bf16.msra.mxu1 %v3467_v40  ;;  %825 = vmatprep.mubr.bf16.mxu0 %v3844_v5 }
  0x59   :  { %3088 = vmatprep.subr.bf16.mxu0 %v3468_v41  ;;  %890 = vmatprep.mubr.bf16.mxu1 %v3849_v6 }
  0x5a   :  { %3128 = vmatprep.subr.bf16.mxu1 %v3469_v42 }
  0x5b   :  { %3089 = vmatpush3.bf16.msra.mxu0 %v3470_v43 }
  0x5c   :  { %3129 = vmatpush3.bf16.msra.mxu1 %v3471_v44  ;;  %3090 = vmatprep.subr.bf16.mxu0 %v3472_v49 }
  0x5d   :  { %3130 = vmatprep.subr.bf16.mxu1 %v3473_v50 }
  0x5e   :  { %826 = vmatmul.mubr.bf16.gmra.mrb[28].mxu0 %v3855_v7 }
  0x5f   :  { %891 = vmatmul.mubr.bf16.gmra.mrb[28].mxu1 %v3860_v8  ;;  %3091 = vmatpush3.bf16.msra.mxu0 %v3474_v51 }
  0x60   :  { %3131 = vmatpush3.bf16.msra.mxu1 %v3475_v52  ;;  %1196 = vmatprep.mubr.bf16.mxu0 %v3700_v33 }
  0x61   :  { %3092 = vmatprep.subr.bf16.mxu0 %v3476_v53  ;;  %1261 = vmatprep.mubr.bf16.mxu1 %v3705_v34 }
  0x62   :  { %3132 = vmatprep.subr.bf16.mxu1 %v3477_v54 }
  0x63   :  { %3093 = vmatpush3.bf16.msra.mxu0 %v3478_v55 }
  0x64   :  { %3133 = vmatpush3.bf16.msra.mxu1 %v3479_v56  ;;  %3158 = vmatprep.subr.bf16.mxu0 %v3480_v61 }
  0x65   :  { %3198 = vmatprep.subr.bf16.mxu1 %v3481_v62 }
  0x66   :  { %1197 = vmatmul.mubr.bf16.vlgmr.msra.gmra.mrb[32].mxu0 %v3711_v35 }
  0x67   :  { %1262 = vmatmul.mubr.bf16.vlgmr.msra.gmra.mrb[32].mxu1 %v3716_v36  ;;  %3159 = vmatpush3.bf16.msra.mxu0 %v3482_v63 }
  0x68   :  { %3199 = vmatpush3.bf16.msra.mxu1 %v3483_v0  ;;  %1204 = vmatprep.mubr.bf16.mxu0 %v3748_v45 }
  0x69   :  { %3160 = vmatprep.subr.bf16.mxu0 %v3484_v1  ;;  %1269 = vmatprep.mubr.bf16.mxu1 %v3753_v46 }
  0x6a   :  { %3200 = vmatprep.subr.bf16.mxu1 %v3485_v2 }
  0x6b   :  { %3161 = vmatpush3.bf16.msra.mxu0 %v3486_v3 }
  0x6c   :  { %3201 = vmatpush3.bf16.msra.mxu1 %v3487_v4  ;;  %3162 = vmatprep.subr.bf16.mxu0 %v3488_v9 }
  0x6d   :  { %3202 = vmatprep.subr.bf16.mxu1 %v3489_v10 }
  0x6e   :  { %1205 = vmatmul.mubr.bf16.gmra.mrb[36].mxu0 %v3758_v47 }
  0x6f   :  { %1270 = vmatmul.mubr.bf16.gmra.mrb[36].mxu1 %v3764_v48  ;;  %3163 = vmatpush3.bf16.msra.mxu0 %v3490_v11 }
  0x70   :  { %3203 = vmatpush3.bf16.msra.mxu1 %v3491_v12  ;;  %1212 = vmatprep.mubr.bf16.mxu0 %v3796_v57 }
  0x71   :  { %3164 = vmatprep.subr.bf16.mxu0 %v3492_v13  ;;  %1277 = vmatprep.mubr.bf16.mxu1 %v3801_v58 }
  0x72   :  { %3204 = vmatprep.subr.bf16.mxu1 %v3493_v14 }
  0x73   :  { %3165 = vmatpush3.bf16.msra.mxu0 %v3494_v15 }
  0x74   :  { %3205 = vmatpush3.bf16.msra.mxu1 %v3495_v16  ;;  %3166 = vmatprep.subr.bf16.mxu0 %v3496_v17 }
  0x75   :  { %3206 = vmatprep.subr.bf16.mxu1 %v3497_v18 }
  0x76   :  { %1213 = vmatmul.mubr.bf16.gmra.mrb[40].mxu0 %v3806_v59 }
  0x77   :  { %1278 = vmatmul.mubr.bf16.gmra.mrb[40].mxu1 %v3811_v60  ;;  %3167 = vmatpush3.bf16.msra.mxu0 %v3498_v19 }
  0x78   :  { %3207 = vmatpush3.bf16.msra.mxu1 %v3499_v20  ;;  %1220 = vmatprep.mubr.bf16.mxu0 %v3844_v5 }
  0x79   :  { %3168 = vmatprep.subr.bf16.mxu0 %v3500_v21  ;;  %1285 = vmatprep.mubr.bf16.mxu1 %v3849_v6 }
  0x7a   :  { %3208 = vmatprep.subr.bf16.mxu1 %v3501_v22 }
  0x7b   :  { %3169 = vmatpush3.bf16.msra.mxu0 %v3502_v23 }
  0x7c   :  { %3209 = vmatpush3.bf16.msra.mxu1 %v3503_v24  ;;  %3170 = vmatprep.subr.bf16.mxu0 %v3504_v25 }
  0x7d   :  { %3210 = vmatprep.subr.bf16.mxu1 %v3505_v26 }
  0x7e   :  { %1221 = vmatmul.mubr.bf16.gmra.mrb[44].mxu0 %v3855_v7 }
  0x7f   :  { %1286 = vmatmul.mubr.bf16.gmra.mrb[44].mxu1 %v3860_v8  ;;  %3171 = vmatpush3.bf16.msra.mxu0 %v3506_v27 }
  0x80   :  { %3211 = vmatpush3.bf16.msra.mxu1 %v3507_v28  ;;  %1591 = vmatprep.mubr.bf16.mxu0 %v3700_v33 }
  0x81   :  { %3172 = vmatprep.subr.bf16.mxu0 %v3508_v29  ;;  %1656 = vmatprep.mubr.bf16.mxu1 %v3705_v34 }
  0x82   :  { %3212 = vmatprep.subr.bf16.mxu1 %v3509_v30 }
  0x83   :  { %14 = vsyncpa [#allocation4], 0  ;;  %3173 = vmatpush3.bf16.msra.mxu0 %v3510_v31  ;;  %v4132_v33 = vld [vmem:[%s4393_s3] sm:$0xff]  ;;  %vm1714_vm0 = vcmask 64512   ;;  %vm1870_vm1 = vcmask 1043456   ;;  %vm1845_vm2 = vcmask 31744  }
  0x84   :  { %3213 = vmatpush3.bf16.msra.mxu1 %v3511_v32  ;;  %3283 = vmatprep.subr.mxu0 %v4132_v33  ;;  %vm2482_vm10 = vcmask 15360   ;;  %s3557_s14 = smov [#allocation3]  }
  0x85   :  { %3353 = vmatprep.subr.mxu1 %v4132_v33  ;;  %s2531_s15 = sshll.u32 %s3557_s14, 4  ;;  %s2532_s15 = int_to_ptr.vmem [resolvable:$true] %s2531_s15 }
  0x86   :  { %1592 = vmatmul.mubr.bf16.vlgmr.msra.gmra.mrb[48].mxu0 %v3711_v35  ;;  %s3532_s16 = scalar_lea.vmem %s2532_s15, 16  ;;  %s3536_s17 = scalar_lea.vmem %s2532_s15, 32 }
  0x87   :  { %1657 = vmatmul.mubr.bf16.vlgmr.msra.gmra.mrb[48].mxu1 %v3716_v36  ;;  %1599 = vmatprep.mubr.bf16.mxu0 %v3748_v45  ;;  %p3533_p0 = scmp.ne.s32.totalorder %s2532_s15, %s3532_s16  ;;  %p3537_p1 = scmp.lt.s32.totalorder %s2532_s15, %s2532_s15 }
  0x88   :  { %1664 = vmatprep.mubr.bf16.mxu1 %v3753_v46  ;;  %3284 = vmatpush3.msra.mxu0 %v4132_v33  ;;  %p3538_p2 = scmp.lt.s32.totalorder %s3536_s17, %s3532_s16 }
  0x89   :  { %3354 = vmatpush3.msra.mxu1 %v4132_v33  ;;  %3311 = vmatprep.subr.mxu0 %v4132_v33 }
  0x8a   :  { %p3539_p3 = por %p3538_p2, %p3537_p1 }
  0x8c   :  { %p3540_p4 = pnand %p3539_p3, %p3533_p0 }
  0x8e   :  { %1600 = vmatmul.mubr.bf16.gmra.mrb[52].mxu0 %v3758_v47 }
  0x8f   :  { %1665 = vmatmul.mubr.bf16.gmra.mrb[52].mxu1 %v3764_v48  ;;  %1607 = vmatprep.mubr.bf16.mxu0 %v3796_v57 }
  0x90   :  { %1672 = vmatprep.mubr.bf16.mxu1 %v3801_v58 }
  0x96   :  { %1608 = vmatmul.mubr.bf16.gmra.mrb[56].mxu0 %v3806_v59 }
  0x97   :  { %1673 = vmatmul.mubr.bf16.gmra.mrb[56].mxu1 %v3811_v60  ;;  %1615 = vmatprep.mubr.bf16.mxu0 %v3844_v5 }
  0x98   :  { %1680 = vmatprep.mubr.bf16.mxu1 %v3849_v6 }
  0x9e   :  { %1616 = vmatmul.mubr.bf16.gmra.mrb[60].mxu0 %v3855_v7 }
  0x9f   :  { %1681 = vmatmul.mubr.bf16.gmra.mrb[60].mxu1 %v3860_v8 }
  0xf8   :  { %v2934_v34 = vpop.f32.mrb[0].mxu0 }
  0xf9   :  { %v2974_v35 = vpop.f32.mrb[0].mxu1  ;;  %v2935_v36 = vpop.f32.mrb[1].mxu0 }
  0xfa   :  { %v2975_v45 = vpop.f32.mrb[1].mxu1  ;;  %v2936_v46 = vadd.f32 %v2935_v36, %v2934_v34  ;;  %v2937_v48 = vpop.f32.mrb[2].mxu0 }
  0xfb   :  { %v2976_v47 = vadd.f32 %v2975_v45, %v2974_v35  ;;  %v2977_v57 = vpop.f32.mrb[2].mxu1  ;;  %v2938_v58 = vpop.f32.mrb[3].mxu0 }
  0xfc   :  { %v2978_v59 = vpop.f32.mrb[3].mxu1  ;;  %v2939_v5 = vadd.f32 %v2938_v58, %v2937_v48 }
  0xfd   :  { %v4139_v60 = vadd.f32 %v2976_v47, %v2936_v46  ;;  %v2979_v6 = vadd.f32 %v2978_v59, %v2977_v57 }
  0xff   :  { %v4141_v7 = vadd.f32 %v2979_v6, %v2939_v5 }
 0x100   :  { %v2940_v8 = vpop.f32.mrb[4].mxu0 }
 0x101   :  { %v2980_v37 = vpop.f32.mrb[4].mxu1  ;;  %v2941_v38 = vpop.f32.mrb[5].mxu0 }
 0x102   :  { %v2942_v39 = vadd.f32 %v2941_v38, %v2940_v8  ;;  %v2981_v40 = vpop.f32.mrb[5].mxu1  ;;  %v2943_v41 = vpop.f32.mrb[6].mxu0 }
 0x103   :  { %v2982_v42 = vadd.f32 %v2981_v40, %v2980_v37  ;;  %v2983_v43 = vpop.f32.mrb[6].mxu1  ;;  %v2944_v44 = vpop.f32.mrb[7].mxu0 }
 0x104   :  { %v2945_v49 = vadd.f32 %v2944_v44, %v2943_v41  ;;  %v2984_v50 = vpop.f32.mrb[7].mxu1 }
 0x105   :  { %v4143_v51 = vadd.f32 %v2982_v42, %v2942_v39  ;;  %v2985_v52 = vadd.f32 %v2984_v50, %v2983_v43 }
 0x107   :  { %v4145_v53 = vadd.f32 %v2985_v52, %v2945_v49 }
 0x108   :  { %v2946_v54 = vpop.f32.mrb[8].mxu0 }
 0x109   :  { %v2986_v55 = vpop.f32.mrb[8].mxu1  ;;  %v2947_v56 = vpop.f32.mrb[9].mxu0 }
 0x10a   :  { %v2948_v61 = vadd.f32 %v2947_v56, %v2946_v54  ;;  %v2987_v62 = vpop.f32.mrb[9].mxu1  ;;  %v2949_v63 = vpop.f32.mrb[10].mxu0 }
 0x10b   :  { %v2988_v0 = vadd.f32 %v2987_v62, %v2986_v55  ;;  %v2989_v1 = vpop.f32.mrb[10].mxu1  ;;  %v2950_v2 = vpop.f32.mrb[11].mxu0 }
 0x10c   :  { %v2951_v3 = vadd.f32 %v2950_v2, %v2949_v63  ;;  %v2990_v4 = vpop.f32.mrb[11].mxu1 }
 0x10d   :  { %v4147_v9 = vadd.f32 %v2988_v0, %v2948_v61  ;;  %v2991_v10 = vadd.f32 %v2990_v4, %v2989_v1 }
 0x10f   :  { %v4149_v11 = vadd.f32 %v2991_v10, %v2951_v3 }
 0x110   :  { %v2952_v12 = vpop.f32.mrb[12].mxu0 }
 0x111   :  { %v2992_v13 = vpop.f32.mrb[12].mxu1  ;;  %v2953_v14 = vpop.f32.mrb[13].mxu0 }
 0x112   :  { %v2993_v15 = vpop.f32.mrb[13].mxu1  ;;  %v2954_v16 = vadd.f32 %v2953_v14, %v2952_v12  ;;  %v2955_v18 = vpop.f32.mrb[14].mxu0 }
 0x113   :  { %v2994_v17 = vadd.f32 %v2993_v15, %v2992_v13  ;;  %v2995_v19 = vpop.f32.mrb[14].mxu1  ;;  %v2956_v20 = vpop.f32.mrb[15].mxu0 }
 0x114   :  { %v2996_v21 = vpop.f32.mrb[15].mxu1  ;;  %v2957_v23 = vadd.f32 %v2956_v20, %v2955_v18 }
 0x115   :  { %v4151_v22 = vadd.f32 %v2994_v17, %v2954_v16  ;;  %v2997_v24 = vadd.f32 %v2996_v21, %v2995_v19 }
 0x117   :  { %v4153_v25 = vadd.f32 %v2997_v24, %v2957_v23 }
 0x119   :  { %v3014_v26 = vpop.f32.mrb[16].mxu0 }
 0x11a   :  { %v3054_v27 = vpop.f32.mrb[16].mxu1  ;;  %v3015_v28 = vpop.f32.mrb[17].mxu0 }
 0x11b   :  { %v3016_v29 = vadd.f32 %v3015_v28, %v3014_v26  ;;  %v3055_v30 = vpop.f32.mrb[17].mxu1  ;;  %v3017_v31 = vpop.f32.mrb[18].mxu0 }
 0x11c   :  { %v3056_v32 = vadd.f32 %v3055_v30, %v3054_v27  ;;  %v3057_v34 = vpop.f32.mrb[18].mxu1  ;;  %v3018_v35 = vpop.f32.mrb[19].mxu0 }
 0x11d   :  { %v3019_v36 = vadd.f32 %v3018_v35, %v3017_v31  ;;  %v3058_v45 = vpop.f32.mrb[19].mxu1 }
 0x11e   :  { %v4155_v46 = vadd.f32 %v3056_v32, %v3016_v29  ;;  %v3059_v47 = vadd.f32 %v3058_v45, %v3057_v34 }
 0x120   :  { %v899_v48 = vmax.f32 %v4139_v60, %v4155_v46  ;;  %v4159_v57 = vadd.f32 %v3059_v47, %v3019_v36 }
 0x121   :  { %v3020_v58 = vpop.f32.mrb[20].mxu0 }
 0x122   :  { %v900_v59 = vmax.f32 %v4141_v7, %v4159_v57  ;;  %v3060_v5 = vpop.f32.mrb[20].mxu1  ;;  %v3021_v6 = vpop.f32.mrb[21].mxu0 }
 0x123   :  { %v3022_v8 = vadd.f32 %v3021_v6, %v3020_v58  ;;  %v3061_v37 = vpop.f32.mrb[21].mxu1  ;;  %v3023_v38 = vpop.f32.mrb[22].mxu0 }
 0x124   :  { %v3062_v39 = vadd.f32 %v3061_v37, %v3060_v5  ;;  %v3063_v40 = vpop.f32.mrb[22].mxu1  ;;  %v3024_v41 = vpop.f32.mrb[23].mxu0 }
 0x125   :  { %v3025_v42 = vadd.f32 %v3024_v41, %v3023_v38  ;;  %v3064_v43 = vpop.f32.mrb[23].mxu1 }
 0x126   :  { %v4163_v44 = vadd.f32 %v3062_v39, %v3022_v8  ;;  %v3065_v49 = vadd.f32 %v3064_v43, %v3063_v40 }
 0x128   :  { %v901_v50 = vmax.f32 %v4143_v51, %v4163_v44  ;;  %v4167_v52 = vadd.f32 %v3065_v49, %v3025_v42 }
 0x129   :  { %v3026_v54 = vpop.f32.mrb[24].mxu0 }
 0x12a   :  { %v902_v55 = vmax.f32 %v4145_v53, %v4167_v52  ;;  %v3066_v56 = vpop.f32.mrb[24].mxu1  ;;  %v3027_v61 = vpop.f32.mrb[25].mxu0 }
 0x12b   :  { %v3028_v62 = vadd.f32 %v3027_v61, %v3026_v54  ;;  %v3067_v63 = vpop.f32.mrb[25].mxu1  ;;  %v3029_v0 = vpop.f32.mrb[26].mxu0 }
 0x12c   :  { %v3068_v1 = vadd.f32 %v3067_v63, %v3066_v56  ;;  %v3069_v2 = vpop.f32.mrb[26].mxu1  ;;  %v3030_v3 = vpop.f32.mrb[27].mxu0 }
 0x12d   :  { %v3031_v4 = vadd.f32 %v3030_v3, %v3029_v0  ;;  %v3070_v10 = vpop.f32.mrb[27].mxu1 }
 0x12e   :  { %v4171_v12 = vadd.f32 %v3068_v1, %v3028_v62  ;;  %v3071_v13 = vadd.f32 %v3070_v10, %v3069_v2 }
 0x130   :  { %v903_v14 = vmax.f32 %v4147_v9, %v4171_v12  ;;  %v4175_v15 = vadd.f32 %v3071_v13, %v3031_v4 }
 0x131   :  { %v3032_v16 = vpop.f32.mrb[28].mxu0 }
 0x132   :  { %v904_v17 = vmax.f32 %v4149_v11, %v4175_v15  ;;  %v3072_v18 = vpop.f32.mrb[28].mxu1  ;;  %v3033_v19 = vpop.f32.mrb[29].mxu0 }
 0x133   :  { %v3034_v20 = vadd.f32 %v3033_v19, %v3032_v16  ;;  %v3073_v21 = vpop.f32.mrb[29].mxu1  ;;  %v3035_v23 = vpop.f32.mrb[30].mxu0 }
 0x134   :  { %v3074_v24 = vadd.f32 %v3073_v21, %v3072_v18  ;;  %v3075_v26 = vpop.f32.mrb[30].mxu1  ;;  %v3036_v27 = vpop.f32.mrb[31].mxu0 }
 0x135   :  { %v3037_v28 = vadd.f32 %v3036_v27, %v3035_v23  ;;  %v3076_v29 = vpop.f32.mrb[31].mxu1 }
 0x136   :  { %v4179_v30 = vadd.f32 %v3074_v24, %v3034_v20  ;;  %v3077_v31 = vadd.f32 %v3076_v29, %v3075_v26 }
 0x138   :  { %v905_v32 = vmax.f32 %v4151_v22, %v4179_v30  ;;  %v4183_v34 = vadd.f32 %v3077_v31, %v3037_v28 }
 0x139   :  { %v3094_v35 = vpop.f32.mrb[32].mxu0 }
 0x13a   :  { %v906_v36 = vmax.f32 %v4153_v25, %v4183_v34  ;;  %v3134_v45 = vpop.f32.mrb[32].mxu1  ;;  %v3095_v47 = vpop.f32.mrb[33].mxu0 }
 0x13b   :  { %v3096_v58 = vadd.f32 %v3095_v47, %v3094_v35  ;;  %v3135_v5 = vpop.f32.mrb[33].mxu1  ;;  %v3097_v6 = vpop.f32.mrb[34].mxu0 }
 0x13c   :  { %v3136_v8 = vadd.f32 %v3135_v5, %v3134_v45  ;;  %v3137_v37 = vpop.f32.mrb[34].mxu1  ;;  %v3098_v38 = vpop.f32.mrb[35].mxu0 }
 0x13d   :  { %v3099_v39 = vadd.f32 %v3098_v38, %v3097_v6  ;;  %v3138_v40 = vpop.f32.mrb[35].mxu1 }
 0x13e   :  { %v1264_v41 = vadd.f32 %v3136_v8, %v3096_v58  ;;  %v3139_v42 = vadd.f32 %v3138_v40, %v3137_v37 }
 0x140   :  { %v4190_v43 = vmax.f32 %v899_v48, %v1264_v41  ;;  %v1267_v49 = vadd.f32 %v3139_v42, %v3099_v39 }
 0x141   :  { %v3100_v54 = vpop.f32.mrb[36].mxu0 }
 0x142   :  { %v4195_v56 = vmax.f32 %v900_v59, %v1267_v49  ;;  %v3140_v61 = vpop.f32.mrb[36].mxu1  ;;  %v3101_v62 = vpop.f32.mrb[37].mxu0 }
 0x143   :  { %v3102_v63 = vadd.f32 %v3101_v62, %v3100_v54  ;;  %v3141_v0 = vpop.f32.mrb[37].mxu1  ;;  %v3103_v1 = vpop.f32.mrb[38].mxu0 }
 0x144   :  { %v3142_v2 = vadd.f32 %v3141_v0, %v3140_v61  ;;  %v3143_v3 = vpop.f32.mrb[38].mxu1  ;;  %v3104_v4 = vpop.f32.mrb[39].mxu0 }
 0x145   :  { %v3105_v10 = vadd.f32 %v3104_v4, %v3103_v1  ;;  %v3144_v13 = vpop.f32.mrb[39].mxu1 }
 0x146   :  { %v1272_v60 = vadd.f32 %v3142_v2, %v3102_v63  ;;  %v3145_v46 = vadd.f32 %v3144_v13, %v3143_v3 }
 0x148   :  { %v4200_v48 = vmax.f32 %v901_v50, %v1272_v60  ;;  %v1275_v7 = vadd.f32 %v3145_v46, %v3105_v10 }
 0x149   :  { %v3106_v57 = vpop.f32.mrb[40].mxu0 }
 0x14a   :  { %v4205_v59 = vmax.f32 %v902_v55, %v1275_v7  ;;  %v3146_v16 = vpop.f32.mrb[40].mxu1  ;;  %v3107_v18 = vpop.f32.mrb[41].mxu0 }
 0x14b   :  { %v3108_v19 = vadd.f32 %v3107_v18, %v3106_v57  ;;  %v3147_v20 = vpop.f32.mrb[41].mxu1  ;;  %v3109_v21 = vpop.f32.mrb[42].mxu0 }
 0x14c   :  { %v3148_v23 = vadd.f32 %v3147_v20, %v3146_v16  ;;  %v3149_v24 = vpop.f32.mrb[42].mxu1  ;;  %v3110_v26 = vpop.f32.mrb[43].mxu0 }
 0x14d   :  { %v3111_v27 = vadd.f32 %v3110_v26, %v3109_v21  ;;  %v3150_v28 = vpop.f32.mrb[43].mxu1 }
 0x14e   :  { %v1280_v51 = vadd.f32 %v3148_v23, %v3108_v19  ;;  %v3151_v44 = vadd.f32 %v3150_v28, %v3149_v24 }
 0x150   :  { %v4210_v50 = vmax.f32 %v903_v14, %v1280_v51  ;;  %v1283_v53 = vadd.f32 %v3151_v44, %v3111_v27 }
 0x151   :  { %v3112_v52 = vpop.f32.mrb[44].mxu0 }
 0x152   :  { %v4215_v55 = vmax.f32 %v904_v17, %v1283_v53  ;;  %v3152_v29 = vpop.f32.mrb[44].mxu1  ;;  %v3113_v31 = vpop.f32.mrb[45].mxu0 }
 0x153   :  { %v3114_v35 = vadd.f32 %v3113_v31, %v3112_v52  ;;  %v3153_v45 = vpop.f32.mrb[45].mxu1  ;;  %v3115_v47 = vpop.f32.mrb[46].mxu0 }
 0x154   :  { %v3154_v58 = vadd.f32 %v3153_v45, %v3152_v29  ;;  %v3155_v5 = vpop.f32.mrb[46].mxu1  ;;  %v3116_v6 = vpop.f32.mrb[47].mxu0 }
 0x155   :  { %v3117_v8 = vadd.f32 %v3116_v6, %v3115_v47  ;;  %v3156_v37 = vpop.f32.mrb[47].mxu1 }
 0x156   :  { %v1288_v9 = vadd.f32 %v3154_v58, %v3114_v35  ;;  %v3157_v12 = vadd.f32 %v3156_v37, %v3155_v5 }
 0x158   :  { %v4220_v14 = vmax.f32 %v905_v32, %v1288_v9  ;;  %v1291_v11 = vadd.f32 %v3157_v12, %v3117_v8 }
 0x159   :  { %v3174_v15 = vpop.f32.mrb[48].mxu0 }
 0x15a   :  { %v4225_v17 = vmax.f32 %v906_v36, %v1291_v11  ;;  %v3214_v38 = vpop.f32.mrb[48].mxu1  ;;  %v3175_v39 = vpop.f32.mrb[49].mxu0 }
 0x15b   :  { %v3176_v40 = vadd.f32 %v3175_v39, %v3174_v15  ;;  %v3215_v41 = vpop.f32.mrb[49].mxu1  ;;  %v3177_v42 = vpop.f32.mrb[50].mxu0 }
 0x15c   :  { %v3216_v49 = vadd.f32 %v3215_v41, %v3214_v38  ;;  %v3217_v54 = vpop.f32.mrb[50].mxu1  ;;  %v3178_v61 = vpop.f32.mrb[51].mxu0 }
 0x15d   :  { %v3179_v62 = vadd.f32 %v3178_v61, %v3177_v42  ;;  %v3218_v63 = vpop.f32.mrb[51].mxu1 }
 0x15e   :  { %v1659_v22 = vadd.f32 %v3216_v49, %v3176_v40  ;;  %v3219_v30 = vadd.f32 %v3218_v63, %v3217_v54 }
 0x160   :  { %v1689_v32 = vmax.f32 %v4190_v43, %v1659_v22  ;;  %v1662_v0 = vadd.f32 %v3219_v30, %v3179_v62 }
 0x161   :  { %v3180_v1 = vpop.f32.mrb[52].mxu0 }
 0x162   :  { %v1697_v2 = vmul.f32 0.2, %v1689_v32  ;;  %v1690_v25 = vmax.f32 %v4195_v56, %v1662_v0  ;;  %v3220_v34 = vpop.f32.mrb[52].mxu1  ;;  %v3181_v36 = vpop.f32.mrb[53].mxu0 }
 0x163   :  { %v3182_v3 = vadd.f32 %v3181_v36, %v3180_v1  ;;  %v3221_v4 = vpop.f32.mrb[53].mxu1  ;;  %v3183_v10 = vpop.f32.mrb[54].mxu0 }
 0x164   :  { %v4229_v13 = vmax.f32 %v1689_v32, %v1697_v2  ;;  %v1698_v60 = vmul.f32 0.2, %v1690_v25  ;;  %v3222_v46 = vadd.f32 %v3221_v4, %v3220_v34  ;;  %v3223_v7 = vpop.f32.mrb[54].mxu1  ;;  %v3184_v57 = vpop.f32.mrb[55].mxu0 }
 0x165   :  { %v3185_v16 = vadd.f32 %v3184_v57, %v3183_v10  ;;  %v3224_v18 = vpop.f32.mrb[55].mxu1  ;;  %v2208_v57 = vld [vmem:[%s4392_s2 + $0x8] sm:$0xff] }
 0x166   :  { %v4231_v43 = vmax.f32 %v1690_v25, %v1698_v60  ;;  %v1667_v19 = vadd.f32 %v3222_v46, %v3182_v3  ;;  %v3225_v20 = vadd.f32 %v3224_v18, %v3223_v7  ;;  %3285 = vmatprep.mubr.msk.f32.mxu0 %vm1714_vm0, %v4229_v13  ;;  %v2207_v7 = vld [vmem:[%s4392_s2] sm:$0xff]  ;;  %v2210_v18 = vld [vmem:[%s4392_s2 + $0x18] sm:$0xff] }
 0x168   :  { %v1691_v56 = vmax.f32 %v4200_v48, %v1667_v19  ;;  %v1670_v21 = vadd.f32 %v3225_v20, %v3185_v16  ;;  %3286 = vmatmul.mubr.msk.f32.vlgmr.msra.gmra.mrb[64].mxu0 %vm1714_vm0, %v4231_v43  ;;  %v2209_v16 = vld [vmem:[%s4392_s2 + $0x10] sm:$0xff]  ;;  %v2211_v19 = vld [vmem:[%s4392_s2 + $0x20] sm:$0xff]  ;;  %v2212_v20 = vld [vmem:[%s4392_s2 + $0x28] sm:$0xff] }
 0x169   :  { %v3186_v23 = vpop.f32.mrb[56].mxu0  ;;  %3312 = vmatpush3.msra.mxu0 %v4132_v33 }
 0x16a   :  { %v1699_v24 = vmul.f32 0.2, %v1691_v56  ;;  %v1692_v26 = vmax.f32 %v4205_v59, %v1670_v21  ;;  %v3226_v27 = vpop.f32.mrb[56].mxu1  ;;  %v3187_v28 = vpop.f32.mrb[57].mxu0  ;;  %v2214_v21 = vld [vmem:[%s4392_s2 + $0x38] sm:$0xff] }
 0x16b   :  { %v3188_v51 = vadd.f32 %v3187_v28, %v3186_v23  ;;  %v3227_v44 = vpop.f32.mrb[57].mxu1  ;;  %v3189_v53 = vpop.f32.mrb[58].mxu0  ;;  %v2352_v23 = vld [vmem:[%s4395_s5] sm:$0xff] }
 0x16c   :  { %v4240_v52 = vmax.f32 %v1691_v56, %v1699_v24  ;;  %v1700_v29 = vmul.f32 0.2, %v1692_v26  ;;  %v3228_v31 = vadd.f32 %v3227_v44, %v3226_v27  ;;  %v3229_v48 = vpop.f32.mrb[58].mxu1  ;;  %v3190_v35 = vpop.f32.mrb[59].mxu0  ;;  %v2213_v56 = vld [vmem:[%s4392_s2 + $0x30] sm:$0xff]  ;;  %3339 = vmatprep.subr.mxu0 %v2352_v23 }
 0x16d   :  { %v3191_v45 = vadd.f32 %v3190_v35, %v3189_v53  ;;  %v3230_v47 = vpop.f32.mrb[59].mxu1 }
 0x16e   :  { %v4242_v58 = vmax.f32 %v1692_v26, %v1700_v29  ;;  %v1675_v5 = vadd.f32 %v3228_v31, %v3188_v51  ;;  %v3231_v33 = vadd.f32 %v3230_v47, %v3229_v48  ;;  %3288 = vmatprep.mubr.msk.f32.mxu0 %vm1714_vm0, %v4240_v52 }
 0x170   :  { %v1693_v59 = vmax.f32 %v4210_v50, %v1675_v5  ;;  %v1678_v6 = vadd.f32 %v3231_v33, %v3191_v45  ;;  %3289 = vmatmul.mubr.msk.f32.gmra.mrb[66].mxu0 %vm1714_vm0, %v4242_v58 }
 0x171   :  { %v3192_v8 = vpop.f32.mrb[60].mxu0 }
 0x172   :  { %v1701_v37 = vmul.f32 0.2, %v1693_v59  ;;  %v1694_v9 = vmax.f32 %v4215_v55, %v1678_v6  ;;  %v3232_v12 = vpop.f32.mrb[60].mxu1  ;;  %v3193_v11 = vpop.f32.mrb[61].mxu0 }
 0x173   :  { %v3194_v15 = vadd.f32 %v3193_v11, %v3192_v8  ;;  %v3233_v38 = vpop.f32.mrb[61].mxu1  ;;  %v3195_v39 = vpop.f32.mrb[62].mxu0 }
 0x174   :  { %v4250_v40 = vmax.f32 %v1693_v59, %v1701_v37  ;;  %v1702_v41 = vmul.f32 0.2, %v1694_v9  ;;  %v3234_v42 = vadd.f32 %v3233_v38, %v3232_v12  ;;  %v3235_v49 = vpop.f32.mrb[62].mxu1  ;;  %v3196_v54 = vpop.f32.mrb[63].mxu0 }
 0x175   :  { %v3197_v50 = vadd.f32 %v3196_v54, %v3195_v39  ;;  %v3236_v61 = vpop.f32.mrb[63].mxu1 }
 0x176   :  { %v4252_v62 = vmax.f32 %v1694_v9, %v1702_v41  ;;  %v1683_v63 = vadd.f32 %v3234_v42, %v3194_v15  ;;  %v3237_v22 = vadd.f32 %v3236_v61, %v3235_v49  ;;  %3291 = vmatprep.mubr.msk.f32.mxu1 %vm1714_vm0, %v4250_v40 }
 0x178   :  { %v1695_v55 = vmax.f32 %v4220_v14, %v1683_v63  ;;  %v1686_v30 = vadd.f32 %v3237_v22, %v3197_v50  ;;  %3292 = vmatmul.mubr.msk.f32.vlgmr.msra.gmra.mrb[64].mxu1 %vm1714_vm0, %v4252_v62  ;;  %v1844_v14 = vld [vmem:[%s4394_s4] sm:$0xf] }
 0x179   :  { %3297 = vmatprep.subr.msk.mxu1 %vm1870_vm1, %v1844_v14 }
 0x17a   :  { %v1703_v32 = vmul.f32 0.2, %v1695_v55  ;;  %v1696_v0 = vmax.f32 %v4225_v17, %v1686_v30  ;;  %3298 = vmatpush3.msk.msra.mxu1 %vm1870_vm1, %v1844_v14 }
 0x17b   :  { %3325 = vmatprep.subr.msk.mxu1 %vm1870_vm1, %v1844_v14 }
 0x17c   :  { %v4260_v1 = vmax.f32 %v1695_v55, %v1703_v32  ;;  %v1704_v2 = vmul.f32 0.2, %v1696_v0 }
 0x17e   :  { %v4262_v25 = vmax.f32 %v1696_v0, %v1704_v2  ;;  %3294 = vmatprep.mubr.msk.f32.mxu1 %vm1714_vm0, %v4260_v1 }
 0x180   :  { %3295 = vmatmul.mubr.msk.f32.gmra.mrb[66].mxu1 %vm1714_vm0, %v4262_v25 }
 0x23b   :  { %v3287_v17 = vpop.f32.mrb[64].mxu0 }
 0x23c   :  { %v1805_v34 = vpop.f32.mrb[65].mxu0 }
 0x23d   :  { %3299 = vmatprep.mubr.msk.f32.mxu1 %vm1845_vm2, %v1805_v34 }
 0x23e   :  { %3300 = vmatmul.mubr.msk.f32.vlgmr.msra.gmra.mrb[68].mxu1 %vm1845_vm2, %v3287_v17 }
 0x23f   :  { %3326 = vmatpush3.msk.msra.mxu1 %vm1870_vm1, %v1844_v14 }
 0x243   :  { %v3290_v36 = vpop.f32.mrb[66].mxu0 }
 0x244   :  { %v1815_v3 = vpop.f32.mrb[67].mxu0 }
 0x245   :  { %3302 = vmatprep.mubr.msk.f32.mxu1 %vm1845_vm2, %v1815_v3 }
 0x246   :  { %3303 = vmatmul.mubr.msk.f32.gmra.mrb[70].mxu1 %vm1845_vm2, %v3290_v36 }
 0x24b   :  { %v3293_v4 = vpop.f32.mrb[64].mxu1 }
 0x24c   :  { %v1825_v10 = vpop.f32.mrb[65].mxu1 }
 0x24d   :  { %3305 = vmatprep.mubr.msk.f32.mxu1 %vm1845_vm2, %v1825_v10 }
 0x24e   :  { %3306 = vmatmul.mubr.msk.f32.gmra.mrb[72].mxu1 %vm1845_vm2, %v3293_v4 }
 0x253   :  { %v3296_v60 = vpop.f32.mrb[66].mxu1 }
 0x254   :  { %v1835_v46 = vpop.f32.mrb[67].mxu1 }
 0x255   :  { %3308 = vmatprep.mubr.msk.f32.mxu1 %vm1845_vm2, %v1835_v46 }
 0x256   :  { %3309 = vmatmul.mubr.msk.f32.gmra.mrb[74].mxu1 %vm1845_vm2, %v3296_v60 }
 0x257   :  { %3327 = vmatprep.mubr.msk.f32.mxu1 %vm1845_vm2, %v2207_v7 }
 0x25a   :  { %3328 = vmatmul.mubr.msk.f32.vlgmr.msra.gmra.mrb[76].mxu1 %vm1845_vm2, %v2208_v57 }
 0x25b   :  { %3330 = vmatprep.mubr.msk.f32.mxu1 %vm1845_vm2, %v2209_v16 }
 0x25e   :  { %3331 = vmatmul.mubr.msk.f32.gmra.mrb[78].mxu1 %vm1845_vm2, %v2210_v18 }
 0x25f   :  { %3333 = vmatprep.mubr.msk.f32.mxu1 %vm1845_vm2, %v2211_v19 }
 0x262   :  { %3334 = vmatmul.mubr.msk.f32.gmra.mrb[80].mxu1 %vm1845_vm2, %v2212_v20 }
 0x263   :  { %3336 = vmatprep.mubr.msk.f32.mxu1 %vm1845_vm2, %v2213_v56 }
 0x266   :  { %3337 = vmatmul.mubr.msk.f32.gmra.mrb[82].mxu1 %vm1845_vm2, %v2214_v21 }
 0x311   :  { %v3301_v24 = vpop.f32.mrb[68].mxu1 }
 0x312   :  { %v1980_v26 = vsub.f32 %v4231_v43, %v3301_v24  ;;  %v1940_v27 = vpop.f32.mrb[69].mxu1 }
 0x313   :  { %v1979_v28 = vsub.f32 %v4229_v13, %v1940_v27 }
 0x314   :  { %v1988_v44 = vmul.f32 %v1980_v26, %v1980_v26 }
 0x315   :  { %v1987_v51 = vmul.f32 %v1979_v28, %v1979_v28 }
 0x317   :  { %3313 = vmatprep.mubr.msk.f32.mxu0 %vm1714_vm0, %v1987_v51 }
 0x318   :  { %3314 = vmatmul.mubr.msk.f32.vlgmr.msra.gmra.mrb[68].mxu0 %vm1714_vm0, %v1988_v44 }
 0x319   :  { %v3304_v53 = vpop.f32.mrb[70].mxu1  ;;  %3340 = vmatpush3.msra.mxu0 %v2352_v23 }
 0x31a   :  { %v1982_v29 = vsub.f32 %v4242_v58, %v3304_v53  ;;  %v1950_v31 = vpop.f32.mrb[71].mxu1 }
 0x31b   :  { %v1981_v48 = vsub.f32 %v4240_v52, %v1950_v31 }
 0x31c   :  { %v1990_v45 = vmul.f32 %v1982_v29, %v1982_v29 }
 0x31d   :  { %v1989_v35 = vmul.f32 %v1981_v48, %v1981_v48 }
 0x31f   :  { %3316 = vmatprep.mubr.msk.f32.mxu0 %vm1714_vm0, %v1989_v35 }
 0x320   :  { %3317 = vmatmul.mubr.msk.f32.gmra.mrb[70].mxu0 %vm1714_vm0, %v1990_v45 }
 0x321   :  { %v3307_v47 = vpop.f32.mrb[72].mxu1 }
 0x322   :  { %v1984_v5 = vsub.f32 %v4252_v62, %v3307_v47  ;;  %v1960_v33 = vpop.f32.mrb[73].mxu1 }
 0x323   :  { %v1983_v59 = vsub.f32 %v4250_v40, %v1960_v33 }
 0x324   :  { %v1992_v8 = vmul.f32 %v1984_v5, %v1984_v5 }
 0x325   :  { %v1991_v6 = vmul.f32 %v1983_v59, %v1983_v59 }
 0x327   :  { %3319 = vmatprep.mubr.msk.f32.mxu0 %vm1714_vm0, %v1991_v6 }
 0x328   :  { %3320 = vmatmul.mubr.msk.f32.gmra.mrb[72].mxu0 %vm1714_vm0, %v1992_v8 }
 0x329   :  { %v3310_v37 = vpop.f32.mrb[74].mxu1 }
 0x32a   :  { %v1986_v9 = vsub.f32 %v4262_v25, %v3310_v37  ;;  %v1970_v12 = vpop.f32.mrb[75].mxu1 }
 0x32b   :  { %v1985_v11 = vsub.f32 %v4260_v1, %v1970_v12 }
 0x32c   :  { %v1994_v39 = vmul.f32 %v1986_v9, %v1986_v9 }
 0x32d   :  { %v1993_v15 = vmul.f32 %v1985_v11, %v1985_v11  ;;  %v3329_v38 = vpop.f32.mrb[76].mxu1 }
 0x32e   :  { %v2305_v41 = vpop.f32.mrb[77].mxu1  ;;  %v2345_v54 = vmul.f32 %v3329_v38, %v4231_v43 }
 0x32f   :  { %v2344_v42 = vmul.f32 %v2305_v41, %v4229_v13  ;;  %3322 = vmatprep.mubr.msk.f32.mxu0 %vm1714_vm0, %v1993_v15 }
 0x330   :  { %3323 = vmatmul.mubr.msk.f32.gmra.mrb[74].mxu0 %vm1714_vm0, %v1994_v39 }
 0x331   :  { %v3332_v49 = vpop.f32.mrb[78].mxu1  ;;  %3341 = vmatprep.mubr.msk.f32.mxu0 %vm1714_vm0, %v2344_v42 }
 0x332   :  { %v2315_v50 = vpop.f32.mrb[79].mxu1  ;;  %v2347_v22 = vmul.f32 %v3332_v49, %v4242_v58 }
 0x333   :  { %v2346_v61 = vmul.f32 %v2315_v50, %v4240_v52 }
 0x334   :  { %3342 = vmatmul.mubr.msk.f32.vlgmr.msra.gmra.mrb[76].mxu0 %vm1714_vm0, %v2345_v54 }
 0x335   :  { %v3335_v63 = vpop.f32.mrb[80].mxu1  ;;  %3344 = vmatprep.mubr.msk.f32.mxu0 %vm1714_vm0, %v2346_v61 }
 0x336   :  { %v2325_v13 = vpop.f32.mrb[81].mxu1  ;;  %v2349_v43 = vmul.f32 %v3335_v63, %v4252_v62 }
 0x337   :  { %v2348_v55 = vmul.f32 %v2325_v13, %v4250_v40 }
 0x338   :  { %3345 = vmatmul.mubr.msk.f32.gmra.mrb[78].mxu0 %vm1714_vm0, %v2347_v22 }
 0x339   :  { %v3338_v30 = vpop.f32.mrb[82].mxu1  ;;  %3347 = vmatprep.mubr.msk.f32.mxu0 %vm1714_vm0, %v2348_v55 }
 0x33a   :  { %v2335_v32 = vpop.f32.mrb[83].mxu1  ;;  %v2351_v0 = vmul.f32 %v3338_v30, %v4262_v25 }
 0x33b   :  { %v2350_v52 = vmul.f32 %v2335_v32, %v4260_v1 }
 0x33c   :  { %3348 = vmatmul.mubr.msk.f32.gmra.mrb[80].mxu0 %vm1714_vm0, %v2349_v43 }
 0x33d   :  { %3350 = vmatprep.mubr.msk.f32.mxu0 %vm1714_vm0, %v2350_v52 }
 0x340   :  { %3351 = vmatmul.mubr.msk.f32.gmra.mrb[82].mxu0 %vm1714_vm0, %v2351_v0 }
 0x3eb   :  { %v3315_v58 = vpop.f32.mrb[68].mxu0 }
 0x3ec   :  { %v2091_v40 = vadd.f32 1e-08, %v3315_v58  ;;  %v2085_v2 = vpop.f32.mrb[69].mxu0 }
 0x3ed   :  { %v2086_v14 = vadd.f32 1e-08, %v2085_v2 }
 0x3ee   :  { %3512 = vrsqrt.f32 %v2091_v40  ;;  %vm2133_vm3 = vcmp.eq.f32.partialorder %v2091_v40, inf  ;;  %v2136_v25 = vand.u32 2147483648, %v2091_v40  ;;  %vm2135_vm5 = vcmp.eq.f32.partialorder %v2091_v40, 0.0 }
 0x3ef   :  { %3514 = vrsqrt.f32 %v2086_v14  ;;  %vm2126_vm4 = vcmp.eq.f32.partialorder %v2086_v14, inf  ;;  %v2129_v46 = vand.u32 2147483648, %v2086_v14  ;;  %vm2128_vm6 = vcmp.eq.f32.partialorder %v2086_v14, 0.0 }
 0x3f3   :  { %v3318_v17 = vpop.f32.mrb[70].mxu0 }
 0x3f4   :  { %v2101_v34 = vadd.f32 1e-08, %v3318_v17  ;;  %v2095_v62 = vpop.f32.mrb[71].mxu0 }
 0x3f5   :  { %v2096_v36 = vadd.f32 1e-08, %v2095_v62 }
 0x3f6   :  { %3516 = vrsqrt.f32 %v2101_v34  ;;  %vm2147_vm8 = vcmp.eq.f32.partialorder %v2101_v34, inf  ;;  %v2150_v5 = vand.u32 2147483648, %v2101_v34  ;;  %vm2149_vm11 = vcmp.eq.f32.partialorder %v2101_v34, 0.0 }
 0x3f7   :  { %3518 = vrsqrt.f32 %v2096_v36  ;;  %vm2140_vm7 = vcmp.eq.f32.partialorder %v2096_v36, inf  ;;  %v2143_v53 = vand.u32 2147483648, %v2096_v36  ;;  %vm2142_vm9 = vcmp.eq.f32.partialorder %v2096_v36, 0.0 }
 0x3f8   :  { %v3513_v1 = vpop.eup %3512 }
 0x3f9   :  { %v3515_v3 = vpop.eup %3514  ;;  %v2132_v4 = vmul.f32 %v3513_v1, %v2091_v40 }
 0x3fa   :  { %v2125_v10 = vmul.f32 %v3515_v3, %v2086_v14 }
 0x3fb   :  { %v3321_v60 = vpop.f32.mrb[72].mxu0  ;;  %v2134_v7 = vsel %vm2133_vm3, %v2091_v40, %v2132_v4 }
 0x3fc   :  { %v2111_v57 = vadd.f32 1e-08, %v3321_v60  ;;  %v2105_v16 = vpop.f32.mrb[73].mxu0  ;;  %v2127_v18 = vsel %vm2126_vm4, %v2086_v14, %v2125_v10  ;;  %v2137_v19 = vsel %vm2135_vm5, %v2136_v25, %v2134_v7 }
 0x3fd   :  { %v2106_v20 = vadd.f32 1e-08, %v2105_v16  ;;  %v2130_v56 = vsel %vm2128_vm6, %v2129_v46, %v2127_v18  ;;  %v2181_v21 = vsel %vm1845_vm2, %v2137_v19, 0.0 }
 0x3fe   :  { %3520 = vrsqrt.f32 %v2111_v57  ;;  %v2180_v24 = vsel %vm1845_vm2, %v2130_v56, 0.0  ;;  %vm2161_vm12 = vcmp.eq.f32.partialorder %v2111_v57, inf  ;;  %v2164_v42 = vand.u32 2147483648, %v2111_v57 }
 0x3ff   :  { %3522 = vrsqrt.f32 %v2106_v20  ;;  %v2182_v28 = vadd.f32 %v2181_v21, %v2180_v24  ;;  %vm2154_vm13 = vcmp.eq.f32.partialorder %v2106_v20, inf  ;;  %v2157_v50 = vand.u32 2147483648, %v2106_v20 }
 0x400   :  { %v3517_v23 = vpop.eup %3516  ;;  %vm2156_vm14 = vcmp.eq.f32.partialorder %v2106_v20, 0.0  ;;  %vm2163_vm15 = vcmp.eq.f32.partialorder %v2111_v57, 0.0 }
 0x401   :  { %v3519_v26 = vpop.eup %3518  ;;  %v2146_v27 = vmul.f32 %v3517_v23, %v2101_v34 }
 0x402   :  { %v2139_v51 = vmul.f32 %v3519_v26, %v2096_v36 }
 0x403   :  { %v3324_v44 = vpop.f32.mrb[74].mxu0  ;;  %v2148_v35 = vsel %vm2147_vm8, %v2101_v34, %v2146_v27 }
 0x404   :  { %v4348_v29 = vadd.f32 1e-08, %v3324_v44  ;;  %v2115_v31 = vpop.f32.mrb[75].mxu0  ;;  %v2141_v48 = vsel %vm2140_vm7, %v2096_v36, %v2139_v51  ;;  %v2151_v59 = vsel %vm2149_vm11, %v2150_v5, %v2148_v35 }
 0x405   :  { %v4350_v45 = vadd.f32 1e-08, %v2115_v31  ;;  %v2144_v47 = vsel %vm2142_vm9, %v2143_v53, %v2141_v48  ;;  %v2185_v49 = vsel %vm1845_vm2, %v2151_v59, 0.0  ;;  %v3556_v53 = vmov 0  }
 0x406   :  { %3524 = vrsqrt.f32 %v4348_v29  ;;  %v2183_v9 = vsel %vm1845_vm2, %v2144_v47, 0.0  ;;  %vm2175_vm0 = vcmp.eq.f32.partialorder %v4348_v29, inf  ;;  %v2178_v25 = vand.u32 2147483648, %v4348_v29  ;;  %3359 = vset.pattern.permute.xlu0 %v3556_v53 }
 0x407   :  { %3526 = vrsqrt.f32 %v4350_v45  ;;  %v3343_v33 = vpop.f32.mrb[76].mxu0  ;;  %v2184_v38 = vadd.f32 %v2183_v9, %v2182_v28  ;;  %vm2168_vm1 = vcmp.eq.f32.partialorder %v4350_v45, inf  ;;  %v2171_v7 = vand.u32 2147483648, %v4350_v45 }
 0x408   :  { %v3521_v6 = vpop.eup %3520  ;;  %v2484_v8 = vsel %vm2482_vm10, %v3343_v33, 0.0  ;;  %v2443_v37 = vpop.f32.mrb[77].mxu0  ;;  %vm2170_vm3 = vcmp.eq.f32.partialorder %v4350_v45, 0.0  ;;  %vm2177_vm4 = vcmp.eq.f32.partialorder %v4348_v29, 0.0  ;;  %v2504_v33 = vld [vmem:[#allocation2] sm:$0x1] }
 0x409   :  { %v3523_v12 = vpop.eup %3522  ;;  %v2483_v11 = vsel %vm2482_vm10, %v2443_v37, 0.0  ;;  %v2160_v15 = vmul.f32 %v3521_v6, %v2111_v57  ;;  %v2186_v63 = vadd.f32 %v2185_v49, %v2184_v38 }
 0x40a   :  { %v2485_v39 = vadd.f32 %v2484_v8, %v2483_v11  ;;  %v2153_v41 = vmul.f32 %v3523_v12, %v2106_v20  ;;  %v2512_v12 = vlaneseq }
 0x40b   :  { %v3346_v54 = vpop.f32.mrb[78].mxu0  ;;  %v2162_v61 = vsel %vm2161_vm12, %v2111_v57, %v2160_v15 }
 0x40c   :  { %v2453_v22 = vpop.f32.mrb[79].mxu0  ;;  %v2155_v13 = vsel %vm2154_vm13, %v2106_v20, %v2153_v41  ;;  %v2165_v43 = vsel %vm2163_vm15, %v2164_v42, %v2162_v61  ;;  %v2488_v0 = vsel %vm2482_vm10, %v3346_v54, 0.0  ;;  %v2513_v15 = vshrl.u32 %v2512_v12, 7 }
 0x40d   :  { %v2486_v55 = vsel %vm2482_vm10, %v2453_v22, 0.0  ;;  %v2158_v30 = vsel %vm2156_vm14, %v2157_v50, %v2155_v13  ;;  %v2189_v34 = vsel %vm1845_vm2, %v2165_v43, 0.0 }
 0x40e   :  { %v2487_v32 = vadd.f32 %v2486_v55, %v2485_v39  ;;  %v2187_v52 = vsel %vm1845_vm2, %v2158_v30, 0.0  ;;  %v2514_v39 = vsub.s32 0, %v2513_v15 }
 0x40f   :  { %v3349_v58 = vpop.f32.mrb[80].mxu0  ;;  %v2188_v40 = vadd.f32 %v2187_v52, %v2186_v63 }
 0x410   :  { %v3525_v2 = vpop.eup %3524  ;;  %v2463_v14 = vpop.f32.mrb[81].mxu0  ;;  %v2489_v17 = vadd.f32 %v2488_v0, %v2487_v32  ;;  %v2492_v60 = vsel %vm2482_vm10, %v3349_v58, 0.0 }
 0x411   :  { %v3527_v62 = vpop.eup %3526  ;;  %v2490_v36 = vsel %vm2482_vm10, %v2463_v14, 0.0  ;;  %v2174_v1 = vmul.f32 %v3525_v2, %v4348_v29  ;;  %v2190_v3 = vadd.f32 %v2189_v34, %v2188_v40 }
 0x412   :  { %v2491_v4 = vadd.f32 %v2490_v36, %v2489_v17  ;;  %v2167_v10 = vmul.f32 %v3527_v62, %v4350_v45 }
 0x413   :  { %v3352_v46 = vpop.f32.mrb[82].mxu0  ;;  %v2176_v57 = vsel %vm2175_vm0, %v4348_v29, %v2174_v1 }
 0x414   :  { %v2473_v16 = vpop.f32.mrb[83].mxu0  ;;  %v2493_v18 = vadd.f32 %v2492_v60, %v2491_v4  ;;  %v2169_v19 = vsel %vm2168_vm1, %v4350_v45, %v2167_v10  ;;  %v2179_v21 = vsel %vm2177_vm4, %v2178_v25, %v2176_v57  ;;  %v2496_v26 = vsel %vm2482_vm10, %v3352_v46, 0.0 }
 0x415   :  { %v2494_v20 = vsel %vm2482_vm10, %v2473_v16, 0.0  ;;  %v2172_v56 = vsel %vm2170_vm3, %v2171_v7, %v2169_v19  ;;  %v2193_v51 = vsel %vm1845_vm2, %v2179_v21, 0.0 }
 0x416   :  { %v2495_v23 = vadd.f32 %v2494_v20, %v2493_v18  ;;  %v2191_v24 = vsel %vm1845_vm2, %v2172_v56, 0.0  ;;  %vm2523_vm2 = vcmask 8192  }
 0x417   :  { %v2192_v27 = vadd.f32 %v2191_v24, %v2190_v3 }
 0x418   :  { %v2497_v28 = vadd.f32 %v2496_v26, %v2495_v23 }
 0x419   :  { %v2194_v44 = vadd.f32 %v2193_v51, %v2192_v27 }
 0x41a   :  { %v2498_v8 = vrot.slane %v2497_v28, 4 }
 0x41b   :  { %2195 = vadd.xlane.f32.xlu0 %v2194_v44 }
 0x41c   :  { %v2499_v37 = vadd.f32 %v2498_v8, %v2497_v28 }
 0x41e   :  { %v2500_v9 = vrot.slane %v2499_v37, 2 }
 0x420   :  { %v2501_v11 = vadd.f32 %v2500_v9, %v2499_v37 }
 0x422   :  { %v2502_v38 = vrot.slane %v2501_v11, 1 }
 0x424   :  { %v2503_v42 = vadd.f32 %v2502_v38, %v2501_v11 }
 0x4a8   :  { %v2196_v31 = vpop.xlane.xlu0 %2195 }
 0x4a9   :  { %v2197_v48 = vrot.slane %v2196_v31, 4 }
 0x4ab   :  { %v2198_v29 = vadd.f32 %v2197_v48, %v2196_v31 }
 0x4ad   :  { %v2199_v35 = vrot.slane %v2198_v29, 2 }
 0x4af   :  { %v2200_v45 = vadd.f32 %v2199_v35, %v2198_v29 }
 0x4b1   :  { %v2201_v47 = vrot.slane %v2200_v45, 1 }
 0x4b3   :  { %v2202_v5 = vadd.f32 %v2201_v47, %v2200_v45 }
 0x4b5   :  { %3355 = vpush %v2202_v5 }
 0x4e6   :  { %s3356_s2 = spop %3355 }
 0x4e7   :  { %s2206_s5 = smul.f32 0.00390625, %s3356_s2 }
 0x4e9   :  { %v2505_v59 = vstv %s2206_s5 }
 0x4ea   :  { %v2506_v6 = vmul.f32 %v2505_v59, %v2504_v33 }
 0x4ec   :  { %2509 = vperm.xlu0 %3359, %v2506_v6  }
 0x56b   :  { %v2510_v41 = vpop.permute.xlu0 %2509 }
 0x56c   :  { %v2515_v49 = vrot.slane %v2510_v41, %v2514_v39 }
 0x56e   :  { %v2516_v54 = vadd.f32 %v2515_v49, %v2503_v42 }
 0x570   :  { %v2917_v50 = vmul.f32 -1.442695, %v2516_v54 }
 0x572   :  { %3528 = vpow2.f32 %v2917_v50 }
 0x57c   :  { %v3529_v61 = vpop.eup %3528 }
 0x57d   :  { %v2520_v63 = vadd.f32 1.0, %v3529_v61 }
 0x57f   :  { %3530 = vrcp.f32 %v2520_v63 }
 0x589   :  { %v3531_v22 = vpop.eup %3530 }
 0x58a   :  { %2524 = vst.msk [vmem:[#allocation3] sm:$0x1] %vm2523_vm2, %v3531_v22 }
 0x58b   :  { %3543 = shalt.err (!%p3540_p4)
}
 0x58c   :  { %s3544_s1 = scalar_lea.hbm %s4397_s7, 16 }
 0x58d   :  { %p3545_p5 = scmp.ne.s32.totalorder %s4397_s7, %s3544_s1  ;;  %p3548_p6 = scmp.lt.u32.totalorder %s3544_s1, %s4397_s7 }
 0x58f   :  { %p3550_p7 = pnand %p3548_p6, %p3545_p5 }
 0x591   :  { %3553 = shalt.err (!%p3550_p7)
}
 0x592   :  { %2534 = dma.vmem_to_hbm [thread:$0]  %s2532_s15, 16, %s4397_s7, [#allocation4]  }
 0x593   :  { %3554 = dma.done.wait [#allocation4], 16  }
 0x594   :  { %3555 = vsyncadd [#allocation4], 4294967280 }
 0x595   :  { %2538 = vsyncpa [#allocation4], 1 }

</bundles_post_ra>
